<compile_context>
chip_gen: v5e
topology: v5e:2x2
jax: 0.10.0
libtpu: 0.0.40
codegen_flags: <defaults>
</compile_context>

<pallas_src>
import jax
import jax.numpy as jnp
from jax.experimental import pallas as pl
from jax.experimental.pallas import tpu as pltpu

OMEGA = 30.0  # self.omega (freq hyperparameter), baked in as a compile-time constant


def gabor_kernel(pts_ref, params_ref, cos_ref, sin_ref):
    # pts_ref:    (TN, 3)       -> [dx0, dx1, omega*v] per point
    # params_ref: (8, F_block)  -> [cos_t; sin_t; phase; a; b; 0; 0; 0]
    dx0 = pts_ref[:, 0:1]                       # (TN, 1)
    dx1 = pts_ref[:, 1:2]                       # (TN, 1)
    wv = pts_ref[:, 2:3]                        # (TN, 1)  == omega * v

    cos_t = params_ref[0:1, :]                  # (1, Fb)
    sin_t = params_ref[1:2, :]                  # (1, Fb)
    phase = params_ref[2:3, :]                  # (1, Fb)  == (2*sigmoid(phi)-1)*pi
    a = params_ref[3:4, :]                      # (1, Fb)  == -0.5 * delta^2
    b = params_ref[4:5, :]                      # (1, Fb)  == -0.5 * (gamma*delta)^2

    # Rotated coordinates (VALU; plenty of slack under the EUP bottleneck).
    x_ = dx0 * cos_t + dx1 * sin_t              # (TN, Fb)
    y_ = dx1 * cos_t - dx0 * sin_t              # (TN, Fb)

    env = jnp.exp(x_ * x_ * a + y_ * y_ * b)    # (TN, Fb)  EUP exp
    arg = wv * x_ + phase                       # (TN, Fb)

    cos_ref[...] = (jnp.cos(arg) * env).astype(cos_ref.dtype)
    sin_ref[...] = (jnp.sin(arg) * env).astype(sin_ref.dtype)


def _round_up(a, m):
    return ((a + m - 1) // m) * m


def gabor_layer_d(x, d, v, theta, gamma, phi, delta, *, omega=OMEGA,
                  tile_n=1024, f_block=None, out_dtype=jnp.float32):
    """Pallas wrapper. x, d: (N, 2); v: (N, 1); per-feature params: (F,)."""
    N = x.shape[0]
    F = theta.shape[0]

    # --- Precompute per-feature transcendentals once (outside the grid loop) ---
    theta = theta.astype(jnp.float32)
    gamma = gamma.astype(jnp.float32)
    phi = phi.astype(jnp.float32)
    delta = delta.astype(jnp.float32)

    cos_t = jnp.cos(theta)
    sin_t = jnp.sin(theta)
    phase = (2.0 * jax.nn.sigmoid(phi) - 1.0) * jnp.pi
    a = -0.5 * delta * delta
    b = -0.5 * (gamma * delta) ** 2
    zeros = jnp.zeros_like(a)
    params = jnp.stack([cos_t, sin_t, phase, a, b, zeros, zeros, zeros],
                       axis=0)                                        # (8, F)

    # --- Per-point packing: [dx0, dx1, omega*v] ---
    dx = (x - d).astype(jnp.float32)
    pts = jnp.concatenate([dx, omega * v.astype(jnp.float32)], axis=-1)  # (N, 3)

    # --- Tile sizing: clamp tile_n to (padded) N, keep multiple of 8, pad N ---
    n_pad8 = _round_up(max(N, 1), 8)
    tn = max(8, min(_round_up(tile_n, 8), n_pad8))
    n_padded = _round_up(N, tn)
    if n_padded != N:
        pts = jnp.pad(pts, ((0, n_padded - N), (0, 0)))

    # --- F blocking: lane-dense divisor only when F is large; else whole F ---
    if f_block is None:
        f_block = F
        if F > 512:
            for cand in (512, 384, 256, 128):
                if F % cand == 0:
                    f_block = cand
                    break
    assert F % f_block == 0

    grid = (n_padded // tn, F // f_block)

    out_shape = (
        jax.ShapeDtypeStruct((n_padded, F), out_dtype),
        jax.ShapeDtypeStruct((n_padded, F), out_dtype),
    )

    cos_out, sin_out = pl.pallas_call(
        gabor_kernel,
        out_shape=out_shape,
        grid_spec=pltpu.PrefetchScalarGridSpec(
            num_scalar_prefetch=0,
            grid=grid,
            in_specs=[
                pl.BlockSpec((tn, 3), lambda i, j: (i, 0)),        # per-point tile
                pl.BlockSpec((8, f_block), lambda i, j: (0, j)),   # packed params
            ],
            out_specs=[
                pl.BlockSpec((tn, f_block), lambda i, j: (i, j)),
                pl.BlockSpec((tn, f_block), lambda i, j: (i, j)),
            ],
        ),
        compiler_params=pltpu.CompilerParams(
            dimension_semantics=("parallel", "parallel"),
            vmem_limit_bytes=64 * 1024 * 1024,
        ),
    )(pts, params)

    if n_padded != N:
        cos_out = cos_out[:N]
        sin_out = sin_out[:N]
    return cos_out, sin_out


def gabor_layer_d_ref(x, d, v, theta, gamma, phi, delta, omega):
    """Pure-JAX reference mirroring the PyTorch forward."""
    dx = x - d
    cos_t = jnp.cos(theta)
    sin_t = jnp.sin(theta)
    x_ = dx[:, 0:1] * cos_t + dx[:, 1:2] * sin_t
    y_ = -dx[:, 0:1] * sin_t + dx[:, 1:2] * cos_t
    D = x_ ** 2 + gamma ** 2 * y_ ** 2
    env = jnp.exp(-0.5 * D * delta[None, :] ** 2)
    arg = omega * v * x_ + (2.0 * jax.nn.sigmoid(phi) - 1.0) * jnp.pi
    return jnp.cos(arg) * env, jnp.sin(arg) * env


if __name__ == "__main__":
    F = 128           # out_features

    key = jax.random.PRNGKey(0)
    k_x, k_d, k_v, k_delta, k_phi, k_gamma, k_theta = jax.random.split(key, 7)

    # Deterministic parameter init matching __init__ distributions.
    alpha, beta = 1.0, 1.0
    delta = jax.random.gamma(k_delta, alpha, (F,), jnp.float32) / beta   # Gamma(alpha, beta)
    phi = jax.random.uniform(k_phi, (F,), jnp.float32, -jnp.pi, jnp.pi)  # Uniform(-pi, pi)
    gamma = jax.random.uniform(k_gamma, (F,), jnp.float32, 0.5, 1.0)     # Uniform(0.5, 1.0)
    theta = jax.random.uniform(k_theta, (F,), jnp.float32, -jnp.pi, jnp.pi)

    ok = True
    for N in (64, 200):   # second case exercises the padded (N % tile) path
        kk = jax.random.fold_in(key, N)
        kx, kd, kv = jax.random.split(kk, 3)
        x = jax.random.uniform(kx, (N, 2), jnp.float32, -1.0, 1.0)
        d = jax.random.uniform(kd, (N, 2), jnp.float32, -0.5, 0.5)
        v = jax.random.uniform(kv, (N, 1), jnp.float32, 0.5, 1.5)

        cos_out, sin_out = gabor_layer_d(x, d, v, theta, gamma, phi, delta)
        jax.block_until_ready((cos_out, sin_out))

        cos_ref, sin_ref = gabor_layer_d_ref(x, d, v, theta, gamma, phi, delta, OMEGA)
        ok &= bool(jnp.allclose(cos_out, cos_ref, atol=2e-3, rtol=2e-3))
        ok &= bool(jnp.allclose(sin_out, sin_ref, atol=2e-3, rtol=2e-3))

    assert ok
    print("KERNEL_OK")
</pallas_src>

<mosaic_0001>
module attributes {stable_mosaic.version = 11 : i64} {
  func.func @gabor_kernel(%arg0: i32, %arg1: i32, %arg2: memref<64x3xf32, #tpu.memory_space<vmem>>, %arg3: memref<8x128xf32, #tpu.memory_space<vmem>>, %arg4: memref<64x128xf32, #tpu.memory_space<vmem>>, %arg5: memref<64x128xf32, #tpu.memory_space<vmem>>) attributes {dimension_semantics = [#tpu.dimension_semantics<parallel>, #tpu.dimension_semantics<parallel>], iteration_bounds = array<i64: 1, 1>, scalar_prefetch = 0 : i64, scratch_operands = 0 : i64, tpu.core_type = #tpu.core_type<tc>, window_params = [{transform_indices = @transform_0, window_bounds = array<i64: 64, 3>}, {transform_indices = @transform_1, window_bounds = array<i64: 8, 128>}, {transform_indices = @transform_2, window_bounds = array<i64: 64, 128>}, {transform_indices = @transform_3, window_bounds = array<i64: 64, 128>}]} {
    %c0 = arith.constant 0 : index
    %c0_0 = arith.constant 0 : index
    %0 = vector.load %arg2[%c0, %c0_0] : memref<64x3xf32, #tpu.memory_space<vmem>>, vector<64x1xf32>
    %c0_1 = arith.constant 0 : index
    %c1 = arith.constant 1 : index
    %1 = vector.load %arg2[%c0_1, %c1] : memref<64x3xf32, #tpu.memory_space<vmem>>, vector<64x1xf32>
    %c0_2 = arith.constant 0 : index
    %c2 = arith.constant 2 : index
    %2 = vector.load %arg2[%c0_2, %c2] : memref<64x3xf32, #tpu.memory_space<vmem>>, vector<64x1xf32>
    %c0_3 = arith.constant 0 : index
    %c0_4 = arith.constant 0 : index
    %3 = vector.load %arg3[%c0_3, %c0_4] : memref<8x128xf32, #tpu.memory_space<vmem>>, vector<1x128xf32>
    %c1_5 = arith.constant 1 : index
    %c0_6 = arith.constant 0 : index
    %4 = vector.load %arg3[%c1_5, %c0_6] : memref<8x128xf32, #tpu.memory_space<vmem>>, vector<1x128xf32>
    %c2_7 = arith.constant 2 : index
    %c0_8 = arith.constant 0 : index
    %5 = vector.load %arg3[%c2_7, %c0_8] : memref<8x128xf32, #tpu.memory_space<vmem>>, vector<1x128xf32>
    %c3 = arith.constant 3 : index
    %c0_9 = arith.constant 0 : index
    %6 = vector.load %arg3[%c3, %c0_9] : memref<8x128xf32, #tpu.memory_space<vmem>>, vector<1x128xf32>
    %c4 = arith.constant 4 : index
    %c0_10 = arith.constant 0 : index
    %7 = vector.load %arg3[%c4, %c0_10] : memref<8x128xf32, #tpu.memory_space<vmem>>, vector<1x128xf32>
    %8 = vector.broadcast %0 : vector<64x1xf32> to vector<64x128xf32>
    %9 = vector.broadcast %3 : vector<1x128xf32> to vector<64x128xf32>
    %10 = arith.mulf %8, %9 : vector<64x128xf32>
    %11 = vector.broadcast %1 : vector<64x1xf32> to vector<64x128xf32>
    %12 = vector.broadcast %4 : vector<1x128xf32> to vector<64x128xf32>
    %13 = arith.mulf %11, %12 : vector<64x128xf32>
    %14 = arith.addf %10, %13 : vector<64x128xf32>
    %15 = vector.broadcast %1 : vector<64x1xf32> to vector<64x128xf32>
    %16 = vector.broadcast %3 : vector<1x128xf32> to vector<64x128xf32>
    %17 = arith.mulf %15, %16 : vector<64x128xf32>
    %18 = vector.broadcast %0 : vector<64x1xf32> to vector<64x128xf32>
    %19 = vector.broadcast %4 : vector<1x128xf32> to vector<64x128xf32>
    %20 = arith.mulf %18, %19 : vector<64x128xf32>
    %21 = arith.subf %17, %20 : vector<64x128xf32>
    %22 = arith.mulf %14, %14 : vector<64x128xf32>
    %23 = vector.broadcast %6 : vector<1x128xf32> to vector<64x128xf32>
    %24 = arith.mulf %22, %23 : vector<64x128xf32>
    %25 = arith.mulf %21, %21 : vector<64x128xf32>
    %26 = vector.broadcast %7 : vector<1x128xf32> to vector<64x128xf32>
    %27 = arith.mulf %25, %26 : vector<64x128xf32>
    %28 = arith.addf %24, %27 : vector<64x128xf32>
    %29 = math.exp %28 : vector<64x128xf32>
    %30 = vector.broadcast %2 : vector<64x1xf32> to vector<64x128xf32>
    %31 = arith.mulf %30, %14 : vector<64x128xf32>
    %32 = vector.broadcast %5 : vector<1x128xf32> to vector<64x128xf32>
    %33 = arith.addf %31, %32 : vector<64x128xf32>
    %34 = math.cos %33 : vector<64x128xf32>
    %35 = arith.mulf %34, %29 : vector<64x128xf32>
    %c0_11 = arith.constant 0 : index
    %c0_12 = arith.constant 0 : index
    %36 = vector.load %arg4[%c0_11, %c0_12] : memref<64x128xf32, #tpu.memory_space<vmem>>, vector<64x128xf32>
    tpu.vector_store %arg4[%c0_11, %c0_12], %35 {strides = array<i32>} : memref<64x128xf32, #tpu.memory_space<vmem>>, vector<64x128xf32>,
    %37 = math.sin %33 : vector<64x128xf32>
    %38 = arith.mulf %37, %29 : vector<64x128xf32>
    %c0_13 = arith.constant 0 : index
    %c0_14 = arith.constant 0 : index
    %39 = vector.load %arg5[%c0_13, %c0_14] : memref<64x128xf32, #tpu.memory_space<vmem>>, vector<64x128xf32>
    tpu.vector_store %arg5[%c0_13, %c0_14], %38 {strides = array<i32>} : memref<64x128xf32, #tpu.memory_space<vmem>>, vector<64x128xf32>,
    return
  }
  func.func @transform_0(%arg0: i32, %arg1: i32) -> (i32, i32) {
    %c0_i32 = arith.constant 0 : i32
    %c0_i32_0 = arith.constant 0 : i32
    return %arg0, %c0_i32 : i32, i32
  }
  func.func @transform_1(%arg0: i32, %arg1: i32) -> (i32, i32) {
    %c0_i32 = arith.constant 0 : i32
    %c0_i32_0 = arith.constant 0 : i32
    return %c0_i32, %arg1 : i32, i32
  }
  func.func @transform_2(%arg0: i32, %arg1: i32) -> (i32, i32) {
    %c0_i32 = arith.constant 0 : i32
    return %arg0, %arg1 : i32, i32
  }
  func.func @transform_3(%arg0: i32, %arg1: i32) -> (i32, i32) {
    %c0_i32 = arith.constant 0 : i32
    return %arg0, %arg1 : i32, i32
  }
}

</mosaic_0001>

<bundles_post_ra>
// kernel: tpu_custom_call.1
= control target key start
LH: loop header
LB: loop body
LE: loop exit
PB: predicated region body
PF: predicated region fallthrough
CT: control target
= control target key end

     0   :  { %9 = vsyncpa [#allocation3], 0  ;;  %v4205_v3 = vmov 0   ;;  %s4197_s0 = inlined_call_operand.vmem [shape: f32[64,3], index: 0, kind: input, shape index: {}]   ;;  %s4198_s1 = inlined_call_operand.vmem [shape: f32[8,128], index: 1, kind: input, shape index: {}]   ;;  %s4199_s2 = inlined_call_operand.hbm [shape: f32[64,128], index: 2, kind: output, shape index: {0}]   ;;  %s4200_s3 = inlined_call_operand.hbm [shape: f32[64,128], index: 3, kind: output, shape index: {1}]  }
   0x1   :  { %v19_v0 = vld [vmem:[%s4197_s0 + $0x20] sm:$0xff]  ;;  %v17_v1 = vld [vmem:[%s4197_s0 + $0x10] sm:$0xff]  ;;  %2860 = vset.pattern.permute.xlu2 %v4205_v3  ;;  %2859 = vset.pattern.permute.xlu1 %v4205_v3 }
   0x2   :  { %v15_v2 = vld [vmem:[%s4197_s0] sm:$0xff]  ;;  %2858 = vset.pattern.permute.xlu0 %v4205_v3  ;;  %50 = vperm.xlu2 %2860, %v19_v0  }
   0x3   :  { %40 = vperm.xlu1 %2859, %v17_v1   ;;  %30 = vperm.xlu0 %2858, %v15_v2  }
   0x4   :  { %10 = vsyncpa [#allocation5], 0  ;;  %v20_v4 = vld [vmem:[%s4197_s0 + $0x28] sm:$0xff]  ;;  %v18_v5 = vld [vmem:[%s4197_s0 + $0x18] sm:$0xff]  ;;  %v2946_v9 = vmov 1   ;;  %v2947_v10 = vmov 2  }
   0x5   :  { %v16_v6 = vld [vmem:[%s4197_s0 + $0x8] sm:$0xff]  ;;  %v22_v7 = vld [vmem:[%s4197_s0 + $0x38] sm:$0xff]  ;;  %v21_v8 = vld [vmem:[%s4197_s0 + $0x30] sm:$0xff]  ;;  %s2767_s23 = sshll.u32 %s4199_s2, 4  ;;  %s2955_s24 = smov [#allocation4]   ;;  %s2768_s23 = int_to_ptr.hbm [resolvable:$true] %s2767_s23 }
   0x6   :  { %v3010_v14 = vld [vmem:[%s4198_s1] ss:$0 sm:$0xff]  ;;  %v3015_v15 = vld [vmem:[%s4198_s1 + $0x1] ss:$0 sm:$0xff]  ;;  %v3026_v25 = vld [vmem:[%s4198_s1 + $0x4] ss:$0 sm:$0xff] }
   0x7   :  { %v3031_v27 = vld [vmem:[%s4198_s1 + $0x3] ss:$0 sm:$0xff]  ;;  %v3056_v50 = vld [vmem:[%s4198_s1 + $0x2] ss:$0 sm:$0xff]  ;;  %s2778_s25 = sshll.u32 %s2955_s24, 4  ;;  %s2780_s0 = sshll.u32 %s4200_s3, 4  ;;  %s2779_s25 = int_to_ptr.vmem [resolvable:$true] %s2778_s25  ;;  %s2781_s0 = int_to_ptr.hbm [resolvable:$true] %s2780_s0 }
   0x8   :  { %s2956_s2 = smov 128   ;;  %s2957_s28 = smov 8  }
   0xa   :  { %55 = vperm.xlu2 %2860, %v20_v4  }
   0xb   :  { %45 = vperm.xlu1 %2859, %v18_v5   ;;  %35 = vperm.xlu0 %2858, %v16_v6  }
  0x12   :  { %2861 = vset.pattern.permute.xlu2 %v2946_v9 }
  0x13   :  { %65 = vperm.xlu1 %2859, %v22_v7   ;;  %60 = vperm.xlu0 %2858, %v21_v8  }
  0x14   :  { %78 = vperm.xlu2 %2861, %v15_v2  }
  0x1b   :  { %2863 = vset.pattern.permute.xlu1 %v2946_v9  ;;  %2862 = vset.pattern.permute.xlu0 %v2946_v9 }
  0x1c   :  { %86 = vperm.xlu1 %2863, %v17_v1   ;;  %90 = vperm.xlu2 %2861, %v18_v5  }
  0x1d   :  { %82 = vperm.xlu0 %2862, %v16_v6  }
  0x24   :  { %94 = vperm.xlu1 %2863, %v19_v0   ;;  %98 = vperm.xlu2 %2861, %v20_v4  }
  0x25   :  { %102 = vperm.xlu0 %2862, %v21_v8  }
  0x2c   :  { %106 = vperm.xlu1 %2863, %v22_v7   ;;  %2864 = vset.pattern.permute.xlu2 %v2947_v10 }
  0x2d   :  { %2865 = vset.pattern.permute.xlu0 %v2947_v10  ;;  %209 = vperm.xlu2 %2864, %v15_v2  }
  0x2e   :  { %213 = vperm.xlu0 %2865, %v16_v6  }
  0x34   :  { %2866 = vset.pattern.permute.xlu1 %v2947_v10 }
  0x35   :  { %217 = vperm.xlu1 %2866, %v17_v1   ;;  %221 = vperm.xlu2 %2864, %v18_v5  }
  0x36   :  { %233 = vperm.xlu0 %2865, %v21_v8  }
  0x3d   :  { %225 = vperm.xlu1 %2866, %v19_v0   ;;  %229 = vperm.xlu2 %2864, %v20_v4  }
  0x45   :  { %237 = vperm.xlu1 %2866, %v22_v7  }
  0x5c   :  { %v3005_v11 = vpop.permute.xlu2 %50 }
  0x64   :  { %v56_v12 = vpop.permute.xlu2 %55 }
  0x65   :  { %v139_v33 = vmul.f32 %v3015_v15, %v56_v12  ;;  %v74_v57 = vmul.f32 %v3010_v14, %v56_v12 }
  0x6e   :  { %v79_v13 = vpop.permute.xlu2 %78 }
  0x6f   :  { %v110_v16 = vmul.f32 %v3015_v15, %v79_v13  ;;  %v126_v17 = vmul.f32 %v3010_v14, %v79_v13 }
  0x75   :  { %v3019_v18 = vpop.permute.xlu1 %40  ;;  %v31_v19 = vpop.permute.xlu0 %30 }
  0x76   :  { %v69_v20 = vmul.f32 %v3010_v14, %v31_v19  ;;  %v134_v21 = vmul.f32 %v3015_v15, %v31_v19  ;;  %v91_v22 = vpop.permute.xlu2 %90  ;;  %v136_v62 = vmul.f32 %v3015_v15, %v3019_v18 }
  0x77   :  { %v113_v30 = vmul.f32 %v3015_v15, %v91_v22  ;;  %v129_v31 = vmul.f32 %v3010_v14, %v91_v22 }
  0x78   :  { %v142_v23 = vsub.f32 %v126_v17, %v134_v21  ;;  %v118_v24 = vadd.f32 %v110_v16, %v69_v20  ;;  %v138_v20 = vmul.f32 %v3015_v15, %v3005_v11 }
  0x7a   :  { %v167_v26 = vmul.f32 %v142_v23, %v142_v23  ;;  %v150_v28 = vmul.f32 %v118_v24, %v118_v24 }
  0x7c   :  { %v176_v29 = vmul.f32 %v3026_v25, %v167_v26  ;;  %v159_v32 = vmul.f32 %v3031_v27, %v150_v28  ;;  %v4212_v28 = vmov 2475754826  }
  0x7d   :  { %v46_v34 = vpop.permute.xlu1 %45  ;;  %v3038_v35 = vpop.permute.xlu0 %35 }
  0x7e   :  { %v72_v36 = vmul.f32 %v3010_v14, %v46_v34  ;;  %v137_v37 = vmul.f32 %v3015_v15, %v46_v34  ;;  %v99_v38 = vpop.permute.xlu2 %98  ;;  %v3043_v40 = vadd.f32 %v176_v29, %v159_v32  ;;  %v135_v2 = vmul.f32 %v3015_v15, %v3038_v35 }
  0x7f   :  { %v131_v39 = vmul.f32 %v3010_v14, %v99_v38  ;;  %v115_v58 = vmul.f32 %v3015_v15, %v99_v38 }
  0x80   :  { %v145_v41 = vsub.f32 %v129_v31, %v137_v37  ;;  %v121_v42 = vadd.f32 %v113_v30, %v72_v36  ;;  %v4210_v30 = vmov 2131351028   ;;  %v4203_v36 = vmov 920167782  }
  0x81   :  { %v3045_v43 = vsub.f32 %v131_v39, %v139_v33  ;;  %v3083_v9 = vadd.f32 %v115_v58, %v74_v57  ;;  %v4207_v33 = vmov 2102212464  }
  0x82   :  { %v170_v44 = vmul.f32 %v145_v41, %v145_v41  ;;  %v153_v45 = vmul.f32 %v121_v42, %v121_v42 }
  0x84   :  { %v179_v46 = vmul.f32 %v3026_v25, %v170_v44  ;;  %v162_v47 = vmul.f32 %v3031_v27, %v153_v45 }
  0x85   :  { %v3049_v48 = vpop.permute.xlu1 %65  ;;  %v3051_v49 = vpop.permute.xlu0 %60 }
  0x86   :  { %v3058_v52 = vadd.f32 %v179_v46, %v162_v47  ;;  %v4201_v47 = vmov 1326507024  }
  0x87   :  { %v210_v51 = vpop.permute.xlu2 %209 }
  0x88   :  { %v240_v53 = vmul.f32 %v210_v51, %v118_v24  ;;  %v2948_v24 = vmov 683565275  }
  0x8a   :  { %v3061_v54 = vadd.f32 %v3056_v50, %v240_v53 }
  0x8c   :  { %v257_v55 = vand.u32 2147483647, %v3061_v54  ;;  %v260_v56 = vand.u32 2139095040, %v3061_v54 }
  0x8e   :  { %v261_v59 = vshrl.u32 %v260_v56, 23  ;;  %v264_v60 = vand.u32 8388607, %v257_v55  ;;  %v3069_v61 = vpop.permute.xlu1 %86 }
  0x8f   :  { %v128_v63 = vmul.f32 %v3010_v14, %v3069_v61  ;;  %v3075_v0 = vpop.permute.xlu0 %82  ;;  %v222_v1 = vpop.permute.xlu2 %221 }
  0x90   :  { %v2797_v4 = vadd.s32 4294967169, %v261_v59  ;;  %v127_v5 = vmul.f32 %v3010_v14, %v3075_v0  ;;  %v265_v6 = vor.u32 8388608, %v264_v60  ;;  %v243_v8 = vmul.f32 %v222_v1, %v121_v42 }
  0x91   :  { %v3081_v7 = vsub.f32 %v128_v63, %v136_v62 }
  0x92   :  { %v267_v10 = vadd.s32 1, %v2797_v4  ;;  %v3085_v12 = vsub.f32 %v127_v5, %v135_v2  ;;  %v3088_v13 = vadd.f32 %v3056_v50, %v243_v8  ;;  %v3090_v17 = vshll.u32 %v265_v6, 8 }
  0x94   :  { %vm268_vm0 = vcmp.gt.s32.totalorder %v267_v10, 0  ;;  %v719_v21 = vand.u32 2147483647, %v3088_v13  ;;  %v722_v22 = vand.u32 2139095040, %v3088_v13  ;;  %v306_v38 = vand.u32 65535, %v3090_v17 }
  0x95   :  { %v269_v16 = vsel %vm268_vm0, %v267_v10, 0  ;;  %v307_v44 = vshrl.u32 %v3090_v17, 16 }
  0x96   :  { %v271_v19 = vand.u32 31, %v269_v16  ;;  %v270_v32 = vshrl.u32 %v269_v16, 5  ;;  %v3111_v53 = vand.u32 8388607, %v719_v21  ;;  %v723_v59 = vshrl.u32 %v722_v22, 23  ;;  %v3113_v60 = vpop.permute.xlu1 %94 }
  0x97   :  { %v130_v10 = vmul.f32 %v3010_v14, %v3113_v60 }
  0x98   :  { %v272_v23 = vsub.s32 32, %v271_v19  ;;  %v274_v26 = vshll.u32 %v2948_v24, %v271_v19  ;;  %v277_v29 = vshll.u32 %v4212_v28, %v271_v19  ;;  %v280_v31 = vshll.u32 %v4210_v30, %v271_v19 }
  0x99   :  { %v283_v34 = vshll.u32 %v4207_v33, %v271_v19  ;;  %v286_v37 = vshll.u32 %v4203_v36, %v271_v19  ;;  %vm289_vm1 = vcmp.lt.s32.totalorder %v270_v32, 1  ;;  %vm292_vm2 = vcmp.lt.s32.totalorder %v270_v32, 4 }
  0x9a   :  { %v275_v39 = vshrl.u32 %v4212_v28, %v272_v23  ;;  %v278_v41 = vshrl.u32 %v4210_v30, %v272_v23  ;;  %v281_v42 = vshrl.u32 %v4207_v33, %v272_v23  ;;  %v273_v45 = vshrl.u32 %v2948_v24, %v272_v23 }
  0x9b   :  { %v284_v46 = vshrl.u32 %v4203_v36, %v272_v23  ;;  %v287_v51 = vshrl.u32 %v4201_v47, %v272_v23  ;;  %vm291_vm3 = vcmp.lt.s32.totalorder %v270_v32, 3  ;;  %v2806_v8 = vadd.s32 4294967169, %v723_v59 }
  0x9c   :  { %v276_v56 = vor.u32 %v275_v39, %v274_v26  ;;  %v279_v57 = vor.u32 %v278_v41, %v277_v29  ;;  %v282_v58 = vor.u32 %v281_v42, %v280_v31  ;;  %vm290_vm4 = vcmp.lt.s32.totalorder %v270_v32, 2 }
  0x9d   :  { %v285_v62 = vor.u32 %v284_v46, %v283_v34  ;;  %v288_v63 = vor.u32 %v287_v51, %v286_v37  ;;  %v729_v31 = vadd.s32 1, %v2806_v8  ;;  %v727_v42 = vor.u32 8388608, %v3111_v53 }
  0x9e   :  { %v294_v1 = vsel %vm292_vm2, %v282_v58, 2102212464  ;;  %v297_v2 = vsel %vm289_vm1, %v276_v56, %v279_v57  ;;  %v301_v4 = vsel %vm289_vm1, %v279_v57, %v282_v58  ;;  %v293_v16 = vsel %vm289_vm1, %v273_v45, %v276_v56 }
  0x9f   :  { %v298_v5 = vsel %vm292_vm2, %v285_v62, 920167782  ;;  %v302_v6 = vsel %vm292_vm2, %v288_v63, 1326507024  ;;  %v295_v23 = vsel %vm291_vm3, %v279_v57, %v294_v1  ;;  %v3118_v46 = vsub.f32 %v130_v10, %v138_v20 }
  0xa0   :  { %v299_v19 = vsel %vm291_vm3, %v282_v58, %v298_v5  ;;  %v303_v22 = vsel %vm291_vm3, %v285_v62, %v302_v6  ;;  %v3120_v51 = vsel %vm290_vm4, %v293_v16, %v295_v23  ;;  %vm730_vm5 = vcmp.gt.s32.totalorder %v729_v31, 0 }
  0xa1   :  { %v300_v26 = vsel %vm290_vm4, %v297_v2, %v299_v19  ;;  %v304_v29 = vsel %vm290_vm4, %v301_v4, %v303_v22  ;;  %v731_v10 = vsel %vm730_vm5, %v729_v31, 0 }
  0xa2   :  { %v308_v34 = vand.u32 65535, %v304_v29  ;;  %v309_v37 = vshrl.u32 %v304_v29, 16  ;;  %v330_v39 = vand.u32 65535, %v300_v26  ;;  %v331_v41 = vshrl.u32 %v300_v26, 16 }
  0xa4   :  { %v311_v59 = vmul.u32 %v309_v37, %v306_v38  ;;  %v312_v63 = vmul.u32 %v308_v34, %v307_v44  ;;  %v310_v32 = vmul.u32 %v308_v34, %v306_v38  ;;  %v313_v45 = vmul.u32 %v309_v37, %v307_v44 }
  0xa5   :  { %v333_v56 = vmul.u32 %v331_v41, %v306_v38  ;;  %v334_v57 = vmul.u32 %v330_v39, %v307_v44  ;;  %v332_v1 = vmul.u32 %v330_v39, %v306_v38  ;;  %v335_v2 = vmul.u32 %v331_v41, %v307_v44 }
  0xa6   :  { %v314_v58 = vshll.u32 %v311_v59, 16  ;;  %v315_v62 = vshrl.u32 %v311_v59, 16  ;;  %v316_v4 = vshll.u32 %v312_v63, 16  ;;  %v317_v5 = vshrl.u32 %v312_v63, 16 }
  0xa7   :  { %v336_v6 = vshll.u32 %v333_v56, 16  ;;  %v337_v8 = vshrl.u32 %v333_v56, 16  ;;  %v338_v53 = vshll.u32 %v334_v57, 16  ;;  %v339_v19 = vshrl.u32 %v334_v57, 16 }
  0xa8   :  { %vm318_vm6 = vc.u32 %v310_v32, %v314_v58  ;;  %v320_v20 = vadd.s32 %v314_v58, %v310_v32  ;;  %v733_v38 = vand.u32 31, %v731_v10  ;;  %v3126_v34 = vshrl.u32 %v731_v10, 5 }
  0xa9   :  { %v319_v16 = vsel %vm318_vm6, 1, %v4205_v3  ;;  %vm340_vm7 = vc.u32 %v332_v1, %v336_v6  ;;  %v342_v22 = vadd.s32 %v336_v6, %v332_v1  ;;  %vm259_vm6 = vcmp.lt.s32.totalorder %v3061_v54, 0 }
  0xaa   :  { %v321_v23 = vadd.s32 %v319_v16, %v313_v45  ;;  %vm322_vm8 = vc.u32 %v320_v20, %v316_v4  ;;  %v341_v26 = vsel %vm340_vm7, 1, %v4205_v3  ;;  %v3131_v41 = vsub.s32 32, %v733_v38 }
  0xab   :  { %v323_v44 = vsel %vm322_vm8, 1, %v4205_v3  ;;  %v343_v29 = vadd.s32 %v341_v26, %v335_v2  ;;  %vm344_vm9 = vc.u32 %v342_v22, %v338_v53  ;;  %v3129_v31 = vadd.s32 %v342_v22, %v338_v53 }
  0xac   :  { %v325_v37 = vadd.s32 %v323_v44, %v321_v23  ;;  %v345_v39 = vsel %vm344_vm9, 1, %v4205_v3  ;;  %v736_v63 = vshll.u32 %v2948_v24, %v733_v38  ;;  %v739_v32 = vshll.u32 %v4212_v28, %v733_v38 }
  0xad   :  { %v347_v59 = vadd.s32 %v345_v39, %v343_v29  ;;  %v742_v45 = vshll.u32 %v4210_v30, %v733_v38  ;;  %v737_v57 = vshrl.u32 %v4212_v28, %v3131_v41  ;;  %v740_v58 = vshrl.u32 %v4210_v30, %v3131_v41 }
  0xae   :  { %v326_v56 = vadd.s32 %v325_v37, %v315_v62  ;;  %v745_v1 = vshll.u32 %v4207_v33, %v733_v38  ;;  %v743_v4 = vshrl.u32 %v4207_v33, %v3131_v41  ;;  %v746_v6 = vshrl.u32 %v4203_v36, %v3131_v41 }
  0xaf   :  { %v348_v2 = vadd.s32 %v347_v59, %v337_v8  ;;  %v748_v20 = vshll.u32 %v4203_v36, %v733_v38  ;;  %v3148_v62 = vor.u32 %v737_v57, %v736_v63  ;;  %v3150_v10 = vor.u32 %v740_v58, %v739_v32 }
  0xb0   :  { %v3146_v53 = vadd.s32 %v326_v56, %v317_v5  ;;  %v749_v16 = vshrl.u32 %v4201_v47, %v3131_v41  ;;  %v744_v23 = vor.u32 %v743_v4, %v742_v45  ;;  %v747_v8 = vor.u32 %v746_v6, %v745_v1 }
  0xb1   :  { %v349_v22 = vadd.s32 %v348_v2, %v339_v19  ;;  %v3156_v44 = vshll.u32 %v727_v42, 8  ;;  %v350_v5 = vmul.u32 %v3090_v17, %v3120_v51  ;;  %vm751_vm11 = vcmp.lt.s32.totalorder %v3126_v34, 1 }
  0xb2   :  { %vm352_vm10 = vc.u32 %v3146_v53, %v3129_v31  ;;  %v750_v26 = vor.u32 %v749_v16, %v748_v20  ;;  %vm754_vm12 = vcmp.lt.s32.totalorder %v3126_v34, 4  ;;  %vm753_vm13 = vcmp.lt.s32.totalorder %v3126_v34, 3 }
  0xb3   :  { %v353_v38 = vadd.s32 1, %v349_v22  ;;  %v759_v19 = vsel %vm751_vm11, %v3148_v62, %v3150_v10  ;;  %v760_v29 = vsel %vm754_vm12, %v747_v8, 920167782  ;;  %v763_v42 = vsel %vm751_vm11, %v3150_v10, %v744_v23 }
  0xb4   :  { %vm752_vm14 = vcmp.lt.s32.totalorder %v3126_v34, 2  ;;  %v761_v51 = vsel %vm753_vm13, %v744_v23, %v760_v29  ;;  %v764_v37 = vsel %vm754_vm12, %v750_v26, 1326507024  ;;  %v172_v39 = vmul.f32 %v3045_v43, %v3045_v43 }
  0xb5   :  { %v354_v17 = vsel %vm352_vm10, %v353_v38, %v349_v22  ;;  %v762_v63 = vsel %vm752_vm14, %v759_v19, %v761_v51  ;;  %v765_v32 = vsel %vm753_vm13, %v747_v8, %v764_v37  ;;  %v768_v56 = vand.u32 65535, %v3156_v44 }
  0xb6   :  { %v355_v59 = vadd.s32 %v354_v17, %v350_v5  ;;  %v766_v45 = vsel %vm752_vm14, %v763_v42, %v765_v32  ;;  %v792_v57 = vand.u32 65535, %v762_v63  ;;  %v793_v58 = vshrl.u32 %v762_v63, 16 }
  0xb7   :  { %v769_v2 = vshrl.u32 %v3156_v44, 16  ;;  %v770_v4 = vand.u32 65535, %v766_v45  ;;  %v771_v6 = vshrl.u32 %v766_v45, 16  ;;  %v3189_v20 = vmul.f32 %v3010_v14, %v3038_v35 }
  0xb8   :  { %v356_v1 = vadd.s32 536870912, %v355_v59  ;;  %v795_v43 = vmul.u32 %v793_v58, %v768_v56  ;;  %v181_v26 = vmul.f32 %v3026_v25, %v172_v39  ;;  %v794_v38 = vmul.u32 %v792_v57, %v768_v56 }
  0xb9   :  { %v773_v22 = vmul.u32 %v771_v6, %v768_v56  ;;  %v796_v8 = vmul.u32 %v792_v57, %v769_v2  ;;  %v774_v5 = vmul.u32 %v770_v4, %v769_v2  ;;  %v3196_v29 = vmul.f32 %v3015_v15, %v3049_v48 }
  0xba   :  { %v3191_v16 = vshrl.u32 %v356_v1, 30  ;;  %v798_v19 = vshll.u32 %v795_v43, 16  ;;  %v772_v17 = vmul.u32 %v770_v4, %v768_v56  ;;  %v756_v35 = vsel %vm754_vm12, %v744_v23, 2102212464 }
  0xbb   :  { %v776_v51 = vshll.u32 %v773_v22, 16  ;;  %v775_v37 = vmul.u32 %v771_v6, %v769_v2  ;;  %v797_v63 = vmul.u32 %v793_v58, %v769_v2  ;;  %v800_v45 = vshll.u32 %v796_v8, 16 }
  0xbc   :  { %v358_v42 = vshll.u32 %v3191_v16, 30  ;;  %vm802_vm15 = vc.u32 %v794_v38, %v798_v19  ;;  %v778_v57 = vshll.u32 %v774_v5, 16  ;;  %v804_v36 = vadd.s32 %v798_v19, %v794_v38 }
  0xbd   :  { %vm780_vm0 = vc.u32 %v772_v17, %v776_v51  ;;  %v782_v39 = vadd.s32 %v776_v51, %v772_v17  ;;  %v803_v47 = vsel %vm802_vm15, 1, %v4205_v3  ;;  %v140_v56 = vmul.f32 %v3015_v15, %v3051_v49  ;;  %v3224_v51 = vpop.permute.xlu0 %102 }
  0xbe   :  { %v3201_v32 = vsub.s32 %v355_v59, %v358_v42  ;;  %v781_v1 = vsel %vm780_vm0, 1, %v4205_v3  ;;  %v735_v59 = vshrl.u32 %v2948_v24, %v3131_v41  ;;  %v805_v2 = vadd.s32 %v803_v47, %v797_v63 }
  0xbf   :  { %v783_v58 = vadd.s32 %v781_v1, %v775_v37  ;;  %vm784_vm2 = vc.u32 %v782_v39, %v778_v57  ;;  %vm806_vm3 = vc.u32 %v804_v36, %v800_v45  ;;  %v757_v38 = vsel %vm753_vm13, %v3150_v10, %v756_v35  ;;  %v230_v57 = vpop.permute.xlu2 %229  ;;  %v3226_v1 = vpop.permute.xlu1 %106 }
  0xc0   :  { %vm360_vm1 = vcmp.lt.s32.totalorder %v3201_v32, 0  ;;  %v361_v23 = vsub.s32 0, %v3201_v32  ;;  %v755_v6 = vsel %vm751_vm11, %v735_v59, %v3148_v62  ;;  %v155_v19 = vmul.f32 %v3083_v9, %v3083_v9 }
  0xc1   :  { %v111_v41 = vmul.f32 %v3015_v15, %v3075_v0  ;;  %v785_v47 = vsel %vm784_vm2, 1, %v4205_v3  ;;  %v807_v17 = vsel %vm806_vm3, 1, %v4205_v3  ;;  %v777_v37 = vshrl.u32 %v773_v22, 16 }
  0xc2   :  { %v362_v4 = vsel %vm360_vm1, %v361_v23, %v3201_v32  ;;  %v787_v63 = vadd.s32 %v785_v47, %v783_v58  ;;  %v799_v62 = vshrl.u32 %v795_v43, 16  ;;  %v809_v39 = vadd.s32 %v807_v17, %v805_v2 }
  0xc3   :  { %v363_v42 = vclz %v362_v4  ;;  %v758_v35 = vsel %vm752_vm14, %v755_v6, %v757_v38  ;;  %v779_v23 = vshrl.u32 %v774_v5, 16  ;;  %v801_v59 = vshrl.u32 %v796_v8, 16 }
  0xc4   :  { %v788_v0 = vadd.s32 %v787_v63, %v777_v37  ;;  %v810_v4 = vadd.s32 %v809_v39, %v799_v62  ;;  %v132_v3 = vmul.f32 %v3010_v14, %v3224_v51  ;;  %v164_v33 = vmul.f32 %v3031_v27, %v155_v19 }
  0xc5   :  { %v2798_v10 = vadd.s32 4294967294, %v363_v42  ;;  %v3233_v22 = vadd.s32 %v804_v36, %v800_v45  ;;  %v245_v43 = vmul.f32 %v230_v57, %v3083_v9  ;;  %v133_v58 = vmul.f32 %v3010_v14, %v3226_v1 }
  0xc6   :  { %v3238_v34 = vadd.s32 %v788_v0, %v779_v23  ;;  %v811_v5 = vadd.s32 %v810_v4, %v801_v59  ;;  %v3240_v8 = vsub.f32 %v132_v3, %v140_v56  ;;  %v351_v6 = vadd.s32 %v3129_v31, %v3146_v53 }
  0xc7   :  { %vm2799_vm4 = vcmp.lt.s32.totalorder %v2798_v10, 0  ;;  %v3244_v19 = vadd.f32 %v181_v26, %v164_v33  ;;  %v168_v36 = vmul.f32 %v3085_v12, %v3085_v12  ;;  %v812_v9 = vmul.u32 %v3156_v44, %v758_v35 }
  0xc8   :  { %v366_v2 = vsel %vm2799_vm4, 0, %v2798_v10  ;;  %vm814_vm5 = vc.u32 %v3238_v34, %v3233_v22  ;;  %v815_v45 = vadd.s32 1, %v811_v5  ;;  %v3253_v17 = vadd.f32 %v3056_v50, %v245_v43 }
  0xc9   :  { %v367_v38 = vsub.s32 32, %v366_v2  ;;  %v371_v42 = vsub.s32 4294967266, %v366_v2  ;;  %v368_v47 = vshll.u32 %v3201_v32, %v366_v2  ;;  %v381_v31 = vsub.s32 4, %v3191_v16 }
  0xca   :  { %v816_v33 = vsel %vm814_vm5, %v815_v45, %v811_v5  ;;  %v3257_v53 = vsub.f32 %v133_v58, %v3196_v29  ;;  %v119_v12 = vadd.f32 %v111_v41, %v3189_v20  ;;  %v71_v63 = vmul.f32 %v3010_v14, %v3019_v18  ;;  %v214_v45 = vpop.permute.xlu0 %213 }
  0xcb   :  { %v369_v3 = vshrl.u32 %v351_v6, %v367_v38  ;;  %v372_v56 = vadd.s32 127, %v371_v42  ;;  %v817_v37 = vadd.s32 %v816_v33, %v812_v9  ;;  %v192_v32 = vmul.f32 1.442695, %v3043_v40 }
  0xcc   :  { %v4209_v62 = vand.u32 2147483647, %v3253_v17  ;;  %v1030_v39 = vand.u32 2139095040, %v3253_v17  ;;  %v198_v29 = vmul.f32 1.442695, %v3058_v52  ;;  %v382_v20 = vsel %vm259_vm6, %v381_v31, %v3191_v16 }
  0xcd   :  { %v370_v44 = vor.u32 %v369_v3, %v368_v47  ;;  %v373_v26 = vshll.u32 %v372_v56, 23  ;;  %v818_v10 = vadd.s32 536870912, %v817_v37  ;;  %v177_v41 = vmul.f32 %v3026_v25, %v168_v36 }
  0xce   :  { %v1031_v35 = vshrl.u32 %v1030_v39, 23  ;;  %v151_v18 = vmul.f32 %v119_v12, %v119_v12  ;;  %v1034_v0 = vand.u32 8388607, %v4209_v62  ;;  %vm3275_vm7 = vcmp.le.f32.partialorder %v257_v55, 0.7853982 }
  0xcf   :  { %v374_v57 = vor.u32 4788187, %v373_v26  ;;  %v377_v40 = vcvt.s32.f32 %v370_v44  ;;  %v819_v59 = vshrl.u32 %v818_v10, 30  ;;  %v169_v52 = vmul.f32 %v3081_v7, %v3081_v7 }
  0xd0   :  { %v2812_v16 = vadd.s32 4294967169, %v1031_v35  ;;  %v160_v43 = vmul.f32 %v3031_v27, %v151_v18  ;;  %2872 = vpow2.f32 %v192_v32  ;;  %v384_v2 = vsel %vm3275_vm7, 0, %v382_v20 }
  0xd1   :  { %v375_v23 = vand.u32 2147483647, %v374_v57  ;;  %v820_v5 = vshll.u32 %v819_v59, 30  ;;  %v3286_v6 = vmul.f32 %v3010_v14, %v3051_v49  ;;  %v843_v55 = vsub.s32 4, %v819_v59 }
  0xd2   :  { %v1037_v38 = vadd.s32 1, %v2812_v16  ;;  %v3288_v42 = vadd.f32 %v177_v41, %v160_v43  ;;  %2874 = vpow2.f32 %v198_v29  ;;  %v1035_v9 = vor.u32 8388608, %v1034_v0 }
  0xd3   :  { %v378_v58 = vmul.f32 %v377_v40, %v375_v23  ;;  %v3290_v7 = vsub.s32 %v817_v37, %v820_v5  ;;  %v1649_v47 = vadd.s32 3, %v384_v2  ;;  %v112_v3 = vmul.f32 %v3015_v15, %v3069_v61 }
  0xd4   :  { %v3295_v56 = vmul.f32 %v3026_v25, %v169_v52  ;;  %vm1038_vm8 = vcmp.gt.s32.totalorder %v1037_v38, 0  ;;  %vm721_vm9 = vcmp.lt.s32.totalorder %v3088_v13, 0  ;;  %v241_v33 = vmul.f32 %v214_v45, %v119_v12 }
  0xd5   :  { %v379_v36 = vxor.u32 2147483648, %v378_v58  ;;  %vm822_vm10 = vcmp.lt.s32.totalorder %v3290_v7, 0  ;;  %v823_v49 = vsub.s32 0, %v3290_v7  ;;  %v844_v61 = vsel %vm721_vm9, %v843_v55, %v819_v59 }
  0xd6   :  { %v1039_v25 = vsel %vm1038_vm8, %v1037_v38, 0  ;;  %v3309_v44 = vpop.eup %2872  ;;  %vm3315_vm11 = vcmp.le.f32.partialorder %v719_v21, 0.7853982  ;;  %v3320_v39 = vshll.u32 %v1035_v9, 8  ;;  %v3322_v57 = vand.u32 3, %v384_v2 }
  0xd7   :  { %v380_v14 = vsel %vm259_vm6, %v379_v36, %v378_v58  ;;  %v824_v32 = vsel %vm822_vm10, %v823_v49, %v3290_v7  ;;  %v3324_v29 = vand.u32 3, %v1649_v47  ;;  %v3328_v10 = vmul.f32 %v3015_v15, %v3224_v51 }
  0xd8   :  { %v3305_v31 = vsel %vm3275_vm7, %v3061_v54, %v380_v14  ;;  %v825_v12 = vclz %v824_v32  ;;  %v3330_v20 = vpop.eup %2874  ;;  %v3334_v35 = vsel %vm3315_vm11, 0, %v844_v61  ;;  %v1041_v18 = vand.u32 31, %v1039_v25 }
  0xd9   :  { %v385_v26 = vmul.f32 %v3305_v31, %v3305_v31  ;;  %v813_v23 = vadd.s32 %v3233_v22, %v3238_v34  ;;  %v3339_v59 = vadd.f32 %v3056_v50, %v241_v33  ;;  %v3341_v0 = vadd.f32 %v112_v3, %v71_v63 }
  0xda   :  { %v2807_v40 = vadd.s32 4294967294, %v825_v12  ;;  %v1042_v4 = vsub.s32 32, %v1041_v18  ;;  %v3344_v52 = vand.u32 65535, %v3320_v39  ;;  %v3347_v16 = vadd.s32 3, %v3334_v35 }
  0xdb   :  { %v386_v41 = vmul.f32 -0.001358992, %v385_v26  ;;  %v393_v21 = vmul.f32 -0.00019511016, %v385_v26  ;;  %v3349_v43 = vshrl.u32 %v1039_v25, 5  ;;  %v3352_v22 = vshrl.u32 %v3320_v39, 16 }
  0xdc   :  { %vm2808_vm12 = vcmp.lt.s32.totalorder %v2807_v40, 0  ;;  %v1044_v63 = vshll.u32 %v2948_v24, %v1041_v18  ;;  %vm406_vm13 = vcmp.eq.s32.totalorder %v3322_v57, 2  ;;  %v1045_v55 = vshrl.u32 %v4212_v28, %v1042_v4 }
  0xdd   :  { %v387_v15 = vadd.f32 0.041655596, %v386_v41  ;;  %v394_v51 = vadd.f32 0.008332121, %v393_v21  ;;  %v828_v58 = vsel %vm2808_vm12, 0, %v2807_v40  ;;  %v1047_v38 = vshll.u32 %v4212_v28, %v1041_v18 }
  0xde   :  { %v829_v2 = vsub.s32 32, %v828_v58  ;;  %v833_v5 = vsub.s32 4294967266, %v828_v58  ;;  %vm1655_vm14 = vcmp.eq.s32.totalorder %v3324_v29, 2  ;;  %v830_v45 = vshll.u32 %v3290_v7, %v828_v58 }
  0xdf   :  { %v388_v34 = vmul.f32 %v387_v15, %v385_v26  ;;  %v395_v50 = vmul.f32 %v394_v51, %v385_v26  ;;  %v1048_v47 = vshrl.u32 %v4210_v30, %v1042_v4  ;;  %vm403_vm15 = vcmp.eq.s32.totalorder %v3322_v57, 0 }
  0xe0   :  { %vm1652_vm0 = vcmp.eq.s32.totalorder %v3324_v29, 0  ;;  %v831_v3 = vshrl.u32 %v813_v23, %v829_v2  ;;  %v834_v14 = vadd.s32 127, %v833_v5  ;;  %v4218_v49 = vmov 2102212464  }
  0xe1   :  { %v389_v36 = vadd.f32 -0.4999988, %v388_v34  ;;  %v396_v9 = vadd.f32 -0.16666654, %v395_v50  ;;  %v1051_v61 = vshrl.u32 %v4218_v49, %v1042_v4  ;;  %v4219_v25 = vmov 920167782  }
  0xe2   :  { %v1054_v33 = vshrl.u32 %v4219_v25, %v1042_v4  ;;  %vm402_vm1 = vcmp.lt.s32.totalorder %v3322_v57, 2  ;;  %vm1651_vm2 = vcmp.lt.s32.totalorder %v3324_v29, 2  ;;  %v1050_v7 = vshll.u32 %v4210_v30, %v1041_v18 }
  0xe3   :  { %v390_v32 = vmul.f32 %v389_v36, %v385_v26  ;;  %v397_v12 = vmul.f32 %v396_v9, %v385_v26  ;;  %v1053_v41 = vshll.u32 %v4218_v49, %v1041_v18  ;;  %vm400_vm3 = vweird.f32 %v3061_v54 }
  0xe4   :  { %v832_v21 = vor.u32 %v831_v3, %v830_v45  ;;  %v835_v40 = vshll.u32 %v834_v14, 23  ;;  %v1046_v23 = vor.u32 %v1045_v55, %v1044_v63  ;;  %v3370_v15 = vor.u32 %v1048_v47, %v1047_v38 }
  0xe5   :  { %v391_v51 = vadd.f32 1.0, %v390_v32  ;;  %v398_v34 = vadd.f32 1.0, %v397_v12  ;;  %v1056_v50 = vshll.u32 %v4219_v25, %v1041_v18  ;;  %v4220_v26 = vmov 1326507024  }
  0xe6   :  { %v1057_v58 = vshrl.u32 %v4220_v26, %v1042_v4  ;;  %v836_v2 = vor.u32 4788187, %v835_v40  ;;  %v1043_v5 = vshrl.u32 %v2948_v24, %v1042_v4  ;;  %v1052_v36 = vor.u32 %v1051_v61, %v1050_v7 }
  0xe7   :  { %v1055_v9 = vor.u32 %v1054_v33, %v1053_v41  ;;  %v399_v62 = vmul.f32 %v398_v34, %v3305_v31  ;;  %v407_v30 = vxor.u32 2147483648, %v391_v51  ;;  %vm1059_vm4 = vcmp.lt.s32.totalorder %v3349_v43, 1 }
  0xe8   :  { %v1058_v28 = vor.u32 %v1057_v58, %v1056_v50  ;;  %v837_v63 = vand.u32 2147483647, %v836_v2  ;;  %v839_v55 = vcvt.s32.f32 %v832_v21  ;;  %vm1060_vm5 = vcmp.lt.s32.totalorder %v3349_v43, 2 }
  0xe9   :  { %vm1061_vm6 = vcmp.lt.s32.totalorder %v3349_v43, 3  ;;  %v404_v18 = vxor.u32 2147483648, %v399_v62  ;;  %v408_v38 = vsel %vm406_vm13, %v407_v30, %v399_v62  ;;  %vm1062_vm7 = vcmp.lt.s32.totalorder %v3349_v43, 4 }
  0xea   :  { %v1067_v31 = vsel %vm1059_vm4, %v1046_v23, %v3370_v15  ;;  %v1657_v4 = vsel %vm1655_vm14, %v407_v30, %v399_v62  ;;  %v840_v45 = vmul.f32 %v839_v55, %v837_v63  ;;  %v1068_v47 = vsel %vm1062_vm7, %v1055_v9, 920167782 }
  0xeb   :  { %v1071_v3 = vsel %vm1059_vm4, %v3370_v15, %v1052_v36  ;;  %v405_v14 = vsel %vm403_vm15, %v391_v51, %v404_v18  ;;  %v1654_v61 = vsel %vm1652_vm0, %v391_v51, %v404_v18  ;;  %v1069_v33 = vsel %vm1061_vm6, %v1052_v36, %v1068_v47 }
  0xec   :  { %v1072_v30 = vsel %vm1062_vm7, %v1058_v28, 1326507024  ;;  %v409_v62 = vsel %vm402_vm1, %v405_v14, %v408_v38  ;;  %v1658_v32 = vsel %vm1651_vm2, %v1654_v61, %v1657_v4  ;;  %v841_v12 = vxor.u32 2147483648, %v840_v45 }
  0xed   :  { %v1070_v7 = vsel %vm1060_vm5, %v1067_v31, %v1069_v33  ;;  %v410_v41 = vsel %vm400_vm3, nan, %v409_v62  ;;  %v1659_v21 = vsel %vm400_vm3, nan, %v1658_v32  ;;  %v1073_v40 = vsel %vm1061_vm6, %v1055_v9, %v1072_v30 }
  0xee   :  { %v1100_v28 = vand.u32 65535, %v1070_v7  ;;  %v1489_v57 = vmul.f32 %v3309_v44, %v410_v41  ;;  %v2745_v51 = vmul.f32 %v3309_v44, %v1659_v21  ;;  %v842_v29 = vsel %vm721_vm9, %v841_v12, %v840_v45 }
  0xef   :  { %v1074_v34 = vsel %vm1060_vm5, %v1071_v3, %v1073_v40  ;;  %v3421_v50 = vsel %vm3315_vm11, %v3088_v13, %v842_v29  ;;  %v1101_v2 = vshrl.u32 %v1070_v7, 16  ;;  %v3426_v44 = vand.u32 3, %v3334_v35 }
  0xf0   :  { %v1078_v54 = vand.u32 65535, %v1074_v34  ;;  %v1079_v58 = vshrl.u32 %v1074_v34, 16  ;;  %1497 = vst [vmem:[#allocation2] sm:$0xff] %v1489_v57  ;;  %v847_v9 = vmul.f32 %v3421_v50, %v3421_v50  ;;  %v3429_v63 = vand.u32 3, %v3347_v16 }
  0xf1   :  { %v411_v55 = vand.u32 2147483647, %v3339_v59  ;;  %2753 = vst [vmem:[#allocation4] sm:$0xff] %v2745_v51  ;;  %v1063_v37 = vsel %vm1059_vm4, %v1043_v5, %v1046_v23  ;;  %v1104_v31 = vmul.u32 %v1100_v28, %v3352_v22  ;;  %v1064_v35 = vsel %vm1062_vm7, %v1052_v36, 2102212464 }
  0xf2   :  { %v1081_v18 = vmul.u32 %v1079_v58, %v3344_v52  ;;  %v1082_v38 = vmul.u32 %v1078_v54, %v3352_v22  ;;  %v848_v4 = vmul.f32 -0.001358992, %v847_v9  ;;  %v855_v45 = vmul.f32 -0.00019511016, %v847_v9 }
  0xf3   :  { %v1103_v16 = vmul.u32 %v1101_v2, %v3344_v52  ;;  %v1080_v47 = vmul.u32 %v1078_v54, %v3344_v52  ;;  %v1083_v3 = vmul.u32 %v1079_v58, %v3352_v22  ;;  %v1102_v23 = vmul.u32 %v1100_v28, %v3344_v52 }
  0xf4   :  { %v1084_v14 = vshll.u32 %v1081_v18, 16  ;;  %v849_v5 = vadd.f32 0.041655596, %v848_v4  ;;  %v856_v61 = vadd.f32 0.008332121, %v855_v45  ;;  %v1105_v33 = vmul.u32 %v1101_v2, %v3352_v22 }
  0xf5   :  { %v1106_v30 = vshll.u32 %v1103_v16, 16  ;;  %v1086_v62 = vshll.u32 %v1082_v38, 16  ;;  %v1108_v12 = vshll.u32 %v1104_v31, 16  ;;  %v4221_v41 = vmov 0  }
  0xf6   :  { %vm1088_vm8 = vc.u32 %v1080_v47, %v1084_v14  ;;  %v1090_v32 = vadd.s32 %v1084_v14, %v1080_v47  ;;  %v850_v7 = vmul.f32 %v849_v5, %v847_v9  ;;  %v857_v36 = vmul.f32 %v856_v61, %v847_v9 }
  0xf7   :  { %v1089_v21 = vsel %vm1088_vm8, 1, %v4221_v41  ;;  %vm1110_vm9 = vc.u32 %v1102_v23, %v1106_v30  ;;  %v1112_v51 = vadd.s32 %v1106_v30, %v1102_v23  ;;  %vm865_vm11 = vcmp.eq.s32.totalorder %v3426_v44, 0 }
  0xf8   :  { %v1091_v40 = vadd.s32 %v1089_v21, %v1083_v3  ;;  %vm1092_vm10 = vc.u32 %v1090_v32, %v1086_v62  ;;  %v1111_v57 = vsel %vm1110_vm9, 1, %v4221_v41  ;;  %v851_v52 = vadd.f32 -0.4999988, %v850_v7 }
  0xf9   :  { %v858_v28 = vadd.f32 -0.16666654, %v857_v36  ;;  %v1093_v29 = vsel %vm1092_vm10, 1, %v4221_v41  ;;  %v1113_v22 = vadd.s32 %v1111_v57, %v1105_v33  ;;  %v1065_v34 = vsel %vm1061_vm6, %v3370_v15, %v1064_v35 }
  0xfa   :  { %v1085_v54 = vshrl.u32 %v1081_v18, 16  ;;  %v1095_v58 = vadd.s32 %v1093_v29, %v1091_v40  ;;  %vm1114_vm12 = vc.u32 %v1112_v51, %v1108_v12  ;;  %v852_v2 = vmul.f32 %v851_v52, %v847_v9 }
  0xfb   :  { %v859_v4 = vmul.f32 %v858_v28, %v847_v9  ;;  %vm864_vm13 = vcmp.lt.s32.totalorder %v3426_v44, 2  ;;  %v1087_v45 = vshrl.u32 %v1082_v38, 16  ;;  %v1115_v47 = vsel %vm1114_vm12, 1, %v4221_v41 }
  0xfc   :  { %vm862_vm14 = vweird.f32 %v3088_v13  ;;  %v1096_v3 = vadd.s32 %v1095_v58, %v1085_v54  ;;  %v1107_v14 = vshrl.u32 %v1103_v16, 16  ;;  %v1117_v23 = vadd.s32 %v1115_v47, %v1113_v22 }
  0xfd   :  { %v414_v5 = vand.u32 2139095040, %v3339_v59  ;;  %v853_v61 = vadd.f32 1.0, %v852_v2  ;;  %v860_v33 = vadd.f32 1.0, %v859_v4  ;;  %v1066_v15 = vsel %vm1060_vm5, %v1063_v37, %v1065_v34 }
  0xfe   :  { %v152_v9 = vmul.f32 %v3341_v0, %v3341_v0  ;;  %v3459_v18 = vadd.s32 %v1096_v3, %v1087_v45  ;;  %v1109_v38 = vshrl.u32 %v1104_v31, 16  ;;  %v1118_v35 = vadd.s32 %v1117_v23, %v1107_v14 }
  0xff   :  { %v415_v30 = vshrl.u32 %v414_v5, 23  ;;  %v861_v62 = vmul.f32 %v860_v33, %v3421_v50  ;;  %v869_v32 = vxor.u32 2147483648, %v853_v61  ;;  %v3462_v16 = vadd.s32 %v1112_v51, %v1108_v12 }
 0x100   :  { %v161_v7 = vmul.f32 %v3031_v27, %v152_v9  ;;  %vm868_vm15 = vcmp.eq.s32.totalorder %v3426_v44, 2  ;;  %vm2116_vm0 = vcmp.lt.s32.totalorder %v3429_v63, 2  ;;  %v1119_v43 = vadd.s32 %v1118_v35, %v1109_v38 }
 0x101   :  { %v2800_v37 = vadd.s32 4294967169, %v415_v30  ;;  %v866_v36 = vxor.u32 2147483648, %v861_v62  ;;  %vm2117_vm1 = vcmp.eq.s32.totalorder %v3429_v63, 0  ;;  %vm2120_vm2 = vcmp.eq.s32.totalorder %v3429_v63, 2 }
 0x102   :  { %vm1122_vm3 = vc.u32 %v3459_v18, %v3462_v16  ;;  %v1120_v50 = vmul.u32 %v3320_v39, %v1066_v15  ;;  %v1123_v31 = vadd.s32 1, %v1119_v43  ;;  %v3473_v27 = vadd.f32 %v3295_v56, %v161_v7 }
 0x103   :  { %v421_v12 = vadd.s32 1, %v2800_v37  ;;  %v867_v21 = vsel %vm865_vm11, %v853_v61, %v866_v36  ;;  %v870_v40 = vsel %vm868_vm15, %v869_v32, %v861_v62  ;;  %v2119_v57 = vsel %vm2117_vm1, %v853_v61, %v866_v36 }
 0x104   :  { %v2122_v51 = vsel %vm2120_vm2, %v869_v32, %v861_v62  ;;  %v871_v52 = vsel %vm864_vm13, %v867_v21, %v870_v40  ;;  %v1124_v29 = vsel %vm1122_vm3, %v1123_v31, %v1119_v43  ;;  %v3489_v63 = vadd.f32 %v3328_v10, %v3286_v6 }
 0x105   :  { %v2123_v28 = vsel %vm2116_vm0, %v2119_v57, %v2122_v51  ;;  %vm422_vm4 = vcmp.gt.s32.totalorder %v421_v12, 0  ;;  %v872_v39 = vsel %vm862_vm14, nan, %v871_v52  ;;  %v1125_v22 = vadd.s32 %v1124_v29, %v1120_v50  ;;  %v3526_v29 = vld [vmem:[%s4198_s1 + $0x4] ss:$0 sm:$0xff] }
 0x106   :  { %v2124_v56 = vsel %vm862_vm14, nan, %v2123_v28  ;;  %v423_v34 = vsel %vm422_vm4, %v421_v12, 0  ;;  %v1492_v54 = vmul.f32 %v3330_v20, %v872_v39  ;;  %v418_v13 = vand.u32 8388607, %v411_v55  ;;  %v218_v12 = vpop.permute.xlu1 %217 }
 0x107   :  { %v2748_v58 = vmul.f32 %v3330_v20, %v2124_v56  ;;  %v425_v2 = vand.u32 31, %v423_v34  ;;  %v1126_v44 = vadd.s32 536870912, %v1125_v22  ;;  %v3493_v47 = vshrl.u32 %v423_v34, 5 }
 0x108   :  { %1500 = vst [vmem:[#allocation2 + $0x18] sm:$0xff] %v1492_v54  ;;  %v4222_v14 = vmov 2475754826   ;;  %v4223_v5 = vmov 2131351028   ;;  %v419_v32 = vor.u32 8388608, %v418_v13  ;;  %v173_v37 = vmul.f32 %v3240_v8, %v3240_v8 }
 0x109   :  { %v426_v4 = vsub.s32 32, %v425_v2  ;;  %2756 = vst [vmem:[#allocation4 + $0x18] sm:$0xff] %v2748_v58  ;;  %v1127_v45 = vshrl.u32 %v1126_v44, 30  ;;  %v428_v3 = vshll.u32 %v2948_v24, %v425_v2  ;;  %v431_v20 = vshll.u32 %v4222_v14, %v425_v2 }
 0x10a   :  { %v437_v33 = vshll.u32 %v4218_v49, %v425_v2  ;;  %v434_v30 = vshll.u32 %v4223_v5, %v425_v2  ;;  %v440_v43 = vshll.u32 %v4219_v25, %v425_v2  ;;  %vm443_vm5 = vcmp.lt.s32.totalorder %v3493_v47, 1 }
 0x10b   :  { %v429_v23 = vshrl.u32 %v4222_v14, %v426_v4  ;;  %v432_v61 = vshrl.u32 %v4223_v5, %v426_v4  ;;  %v435_v6 = vshrl.u32 %v4218_v49, %v426_v4  ;;  %v1128_v10 = vshll.u32 %v1127_v45, 30 }
 0x10c   :  { %v438_v15 = vshrl.u32 %v4219_v25, %v426_v4  ;;  %v441_v9 = vshrl.u32 %v4220_v26, %v426_v4  ;;  %vm446_vm7 = vcmp.lt.s32.totalorder %v3493_v47, 4  ;;  %vm445_vm8 = vcmp.lt.s32.totalorder %v3493_v47, 3 }
 0x10d   :  { %v430_v38 = vor.u32 %v429_v23, %v428_v3  ;;  %v3503_v35 = vor.u32 %v432_v61, %v431_v20  ;;  %v1129_v62 = vsub.s32 %v1125_v22, %v1128_v10  ;;  %v436_v36 = vor.u32 %v435_v6, %v434_v30  ;;  %v3550_v61 = vld [vmem:[%s4198_s1 + $0x2] ss:$0 sm:$0xff] }
 0x10e   :  { %v439_v7 = vor.u32 %v438_v15, %v437_v33  ;;  %v442_v31 = vor.u32 %v441_v9, %v440_v43  ;;  %v3517_v8 = vshll.u32 %v419_v32, 8  ;;  %vm444_vm9 = vcmp.lt.s32.totalorder %v3493_v47, 2 }
 0x10f   :  { %vm1130_vm6 = vcmp.lt.s32.totalorder %v1129_v62, 0  ;;  %v1131_v50 = vsub.s32 0, %v1129_v62  ;;  %v451_v21 = vsel %vm443_vm5, %v430_v38, %v3503_v35  ;;  %v242_v28 = vmul.f32 %v218_v12, %v3341_v0 }
 0x110   :  { %v452_v40 = vsel %vm446_vm7, %v439_v7, 920167782  ;;  %v3529_v39 = vmul.f32 %v3526_v29, %v173_v37  ;;  %v455_v22 = vsel %vm443_vm5, %v3503_v35, %v436_v36  ;;  %v456_v34 = vsel %vm446_vm7, %v442_v31, 1326507024 }
 0x111   :  { %v1132_v57 = vsel %vm1130_vm6, %v1131_v50, %v1129_v62  ;;  %v453_v52 = vsel %vm445_vm8, %v436_v36, %v452_v40  ;;  %vm1029_vm10 = vcmp.lt.s32.totalorder %v3253_v17, 0  ;;  %v1121_v0 = vadd.s32 %v3462_v16, %v3459_v18 }
 0x112   :  { %v1133_v51 = vclz %v1132_v57  ;;  %v454_v56 = vsel %vm444_vm9, %v451_v21, %v453_v52  ;;  %v1151_v58 = vsub.s32 4, %v1127_v45  ;;  %v457_v2 = vsel %vm445_vm8, %v439_v7, %v456_v34 }
 0x113   :  { %v460_v44 = vand.u32 65535, %v3517_v8  ;;  %v461_v13 = vshrl.u32 %v3517_v8, 16  ;;  %v485_v3 = vshrl.u32 %v454_v56, 16  ;;  %v458_v23 = vsel %vm444_vm9, %v455_v22, %v457_v2 }
 0x114   :  { %v2813_v54 = vadd.s32 4294967294, %v1133_v51  ;;  %v484_v20 = vand.u32 65535, %v454_v56  ;;  %v3553_v18 = vadd.f32 %v3550_v61, %v242_v28  ;;  %v427_v6 = vshrl.u32 %v2948_v24, %v426_v4 }
 0x115   :  { %v462_v10 = vand.u32 65535, %v458_v23  ;;  %v463_v33 = vshrl.u32 %v458_v23, 16  ;;  %v1152_v30 = vsel %vm1029_vm10, %v1151_v58, %v1127_v45  ;;  %v487_v32 = vmul.u32 %v485_v3, %v460_v44 }
 0x116   :  { %vm2814_vm11 = vcmp.lt.s32.totalorder %v2813_v54, 0  ;;  %v447_v7 = vsel %vm443_vm5, %v427_v6, %v430_v38  ;;  %v448_v43 = vsel %vm446_vm7, %v436_v36, 2102212464  ;;  %v488_v4 = vmul.u32 %v484_v20, %v461_v13 }
 0x117   :  { %v1136_v16 = vsel %vm2814_vm11, 0, %v2813_v54  ;;  %v465_v37 = vmul.u32 %v463_v33, %v460_v44  ;;  %v466_v50 = vmul.u32 %v462_v10, %v461_v13  ;;  %v464_v40 = vmul.u32 %v462_v10, %v460_v44 }
 0x118   :  { %v1137_v15 = vsub.s32 32, %v1136_v16  ;;  %v1141_v9 = vsub.s32 4294967266, %v1136_v16  ;;  %v1138_v31 = vshll.u32 %v1129_v62, %v1136_v16  ;;  %v486_v51 = vmul.u32 %v484_v20, %v460_v44 }
 0x119   :  { %v468_v57 = vshll.u32 %v465_v37, 16  ;;  %v565_v52 = vand.u32 2147483647, %v3553_v18  ;;  %v467_v56 = vmul.u32 %v463_v33, %v461_v13  ;;  %v490_v22 = vshll.u32 %v487_v32, 16 }
 0x11a   :  { %v1139_v12 = vshrl.u32 %v1121_v0, %v1137_v15  ;;  %v1142_v21 = vadd.s32 127, %v1141_v9  ;;  %v4224_v38 = vand.u32 2147483647, %v3253_v17  ;;  %v470_v36 = vshll.u32 %v466_v50, 16 }
 0x11b   :  { %vm472_vm13 = vc.u32 %v464_v40, %v468_v57  ;;  %v474_v62 = vadd.s32 %v468_v57, %v464_v40  ;;  %v489_v0 = vmul.u32 %v485_v3, %v461_v13  ;;  %v492_v2 = vshll.u32 %v488_v4, 16 }
 0x11c   :  { %v1140_v28 = vor.u32 %v1139_v12, %v1138_v31  ;;  %v1143_v45 = vshll.u32 %v1142_v21, 23  ;;  %vm3565_vm12 = vcmp.le.f32.partialorder %v4224_v38, 0.7853982  ;;  %v473_v58 = vsel %vm472_vm13, 1, %v4221_v41  ;;  %v234_v38 = vpop.permute.xlu0 %233 }
 0x11d   :  { %vm494_vm14 = vc.u32 %v486_v51, %v490_v22  ;;  %v475_v44 = vadd.s32 %v473_v58, %v467_v56  ;;  %vm476_vm15 = vc.u32 %v474_v62, %v470_v36  ;;  %v496_v20 = vadd.s32 %v490_v22, %v486_v51  ;;  %v3584_v62 = vld [vmem:[%s4198_s1 + $0x3] ss:$0 sm:$0xff] }
 0x11e   :  { %v1144_v54 = vor.u32 4788187, %v1143_v45  ;;  %v495_v23 = vsel %vm494_vm14, 1, %v4221_v41  ;;  %v1147_v6 = vcvt.s32.f32 %v1140_v28  ;;  %v477_v10 = vsel %vm476_vm15, 1, %v4221_v41 }
 0x11f   :  { %v497_v33 = vadd.s32 %v495_v23, %v489_v0  ;;  %v469_v15 = vshrl.u32 %v465_v37, 16  ;;  %v479_v9 = vadd.s32 %v477_v10, %v475_v44  ;;  %vm498_vm0 = vc.u32 %v496_v20, %v492_v2 }
 0x120   :  { %v1145_v16 = vand.u32 2147483647, %v1144_v54  ;;  %v568_v13 = vand.u32 2139095040, %v3553_v18  ;;  %v471_v31 = vshrl.u32 %v466_v50, 16  ;;  %v491_v12 = vshrl.u32 %v487_v32, 16 }
 0x121   :  { %v499_v21 = vsel %vm498_vm0, 1, %v4221_v41  ;;  %v480_v40 = vadd.s32 %v479_v9, %v469_v15  ;;  %v156_v51 = vmul.f32 %v3489_v63, %v3489_v63  ;;  %v449_v37 = vsel %vm445_vm8, %v3503_v35, %v448_v43 }
 0x122   :  { %v1148_v3 = vmul.f32 %v1147_v6, %v1145_v16  ;;  %v501_v57 = vadd.s32 %v499_v21, %v497_v33  ;;  %v569_v45 = vshrl.u32 %v568_v13, 23  ;;  %v493_v56 = vshrl.u32 %v488_v4, 16 }
 0x123   :  { %v572_v22 = vand.u32 8388607, %v565_v52  ;;  %v481_v50 = vadd.s32 %v480_v40, %v471_v31  ;;  %v165_v0 = vmul.f32 %v3584_v62, %v156_v51  ;;  %v1154_v35 = vsel %vm3565_vm12, 0, %v1152_v30 }
 0x124   :  { %v1149_v28 = vxor.u32 2147483648, %v1148_v3  ;;  %v502_v32 = vadd.s32 %v501_v57, %v491_v12  ;;  %v2803_v36 = vadd.s32 4294967169, %v569_v45  ;;  %v500_v43 = vadd.s32 %v496_v20, %v492_v2 }
 0x125   :  { %v450_v58 = vsel %vm444_vm9, %v447_v7, %v449_v37  ;;  %v246_v23 = vmul.f32 %v234_v38, %v3489_v63  ;;  %v202_v16 = vmul.f32 1.442695, %v3244_v19  ;;  %v2424_v30 = vadd.s32 3, %v1154_v35 }
 0x126   :  { %v1150_v54 = vsel %vm1029_vm10, %v1149_v28, %v1148_v3  ;;  %v503_v44 = vadd.s32 %v502_v32, %v493_v56  ;;  %vm506_vm1 = vc.u32 %v481_v50, %v500_v43  ;;  %v575_v10 = vadd.s32 1, %v2803_v36 }
 0x127   :  { %v3594_v4 = vsel %vm3565_vm12, %v3253_v17, %v1150_v54  ;;  %v573_v20 = vor.u32 8388608, %v572_v22  ;;  %v3603_v34 = vadd.f32 %v3529_v39, %v165_v0  ;;  %v504_v47 = vmul.u32 %v3517_v8, %v450_v58 }
 0x128   :  { %v1155_v6 = vmul.f32 %v3594_v4, %v3594_v4  ;;  %v507_v2 = vadd.s32 1, %v503_v44  ;;  %vm576_vm2 = vcmp.gt.s32.totalorder %v575_v10, 0  ;;  %v194_v63 = vmul.f32 1.442695, %v3288_v42 }
 0x129   :  { %v577_v19 = vsel %vm576_vm2, %v575_v10, 0  ;;  %v3608_v9 = vadd.f32 %v3550_v61, %v246_v23  ;;  %v3610_v12 = vand.u32 3, %v1154_v35  ;;  %v3612_v21 = vand.u32 3, %v2424_v30 }
 0x12a   :  { %v1156_v33 = vmul.f32 -0.001358992, %v1155_v6  ;;  %v1163_v15 = vmul.f32 -0.00019511016, %v1155_v6  ;;  %v508_v7 = vsel %vm506_vm1, %v507_v2, %v503_v44  ;;  %v579_v39 = vand.u32 31, %v577_v19 }
 0x12b   :  { %v509_v31 = vadd.s32 %v508_v7, %v504_v47  ;;  %v3614_v40 = vshll.u32 %v573_v20, 8  ;;  %2876 = vpow2.f32 %v202_v16  ;;  %v3618_v42 = vmul.f32 %v3118_v46, %v3118_v46 }
 0x12c   :  { %v1157_v13 = vadd.f32 0.041655596, %v1156_v33  ;;  %v1164_v3 = vadd.f32 0.008332121, %v1163_v15  ;;  %2878 = vpow2.f32 %v194_v63  ;;  %v580_v51 = vsub.s32 32, %v579_v39 }
 0x12d   :  { %v510_v45 = vadd.s32 536870912, %v509_v31  ;;  %v1184_v28 = vand.u32 2139095040, %v3608_v9  ;;  %vm413_vm3 = vcmp.lt.s32.totalorder %v3339_v59, 0  ;;  %vm1173_vm4 = vcmp.eq.s32.totalorder %v3610_v12, 0 }
 0x12e   :  { %v1158_v8 = vmul.f32 %v1157_v13, %v1155_v6  ;;  %v1165_v57 = vmul.f32 %v1164_v3, %v1155_v6  ;;  %vm1176_vm5 = vcmp.eq.s32.totalorder %v3610_v12, 2  ;;  %vm2427_vm6 = vcmp.eq.s32.totalorder %v3612_v21, 0 }
 0x12f   :  { %v511_v22 = vshrl.u32 %v510_v45, 30  ;;  %vm2430_vm7 = vcmp.eq.s32.totalorder %v3612_v21, 2  ;;  %v3626_v38 = vadd.s32 %v500_v43, %v481_v50  ;;  %v3629_v46 = vand.u32 65535, %v3614_v40 }
 0x130   :  { %v1159_v37 = vadd.f32 -0.4999988, %v1158_v8  ;;  %v1166_v56 = vadd.f32 -0.16666654, %v1165_v57  ;;  %vm1172_vm8 = vcmp.lt.s32.totalorder %v3610_v12, 2  ;;  %vm2426_vm9 = vcmp.lt.s32.totalorder %v3612_v21, 2 }
 0x131   :  { %v512_v0 = vshll.u32 %v511_v22, 30  ;;  %v3633_v54 = vshrl.u32 %v577_v19, 5  ;;  %vm1170_vm10 = vweird.f32 %v3253_v17  ;;  %v583_v35 = vshrl.u32 %v4222_v14, %v580_v51  ;;  %v2877_v44 = vpop.eup %2876 }
 0x132   :  { %v1160_v32 = vmul.f32 %v1159_v37, %v1155_v6  ;;  %v1167_v36 = vmul.f32 %v1166_v56, %v1155_v6  ;;  %v3638_v58 = vshrl.u32 %v3614_v40, 16  ;;  %v1181_v50 = vand.u32 2147483647, %v3608_v9  ;;  %v3652_v2 = vpop.eup %2878 }
 0x133   :  { %v3641_v43 = vshrl.u32 %v1184_v28, 23  ;;  %vm3645_vm11 = vcmp.le.f32.partialorder %v411_v55, 0.7853982  ;;  %v3649_v10 = vsub.s32 %v509_v31, %v512_v0  ;;  %v582_v30 = vshll.u32 %v2948_v24, %v579_v39 }
 0x134   :  { %v1161_v23 = vadd.f32 1.0, %v1160_v32  ;;  %v1168_v16 = vadd.f32 1.0, %v1167_v36  ;;  %v535_v20 = vsub.s32 4, %v511_v22  ;;  %v585_v33 = vshll.u32 %v4222_v14, %v579_v39 }
 0x135   :  { %v586_v15 = vshrl.u32 %v4223_v5, %v580_v51  ;;  %v588_v47 = vshll.u32 %v4223_v5, %v579_v39  ;;  %vm514_vm12 = vcmp.lt.s32.totalorder %v3649_v10, 0  ;;  %v515_v55 = vsub.s32 0, %v3649_v10 }
 0x136   :  { %v1169_v63 = vmul.f32 %v1168_v16, %v3594_v4  ;;  %v1177_v7 = vxor.u32 2147483648, %v1161_v23  ;;  %vm597_vm13 = vcmp.lt.s32.totalorder %v3633_v54, 1  ;;  %v581_v19 = vshrl.u32 %v2948_v24, %v580_v51 }
 0x137   :  { %v584_v13 = vor.u32 %v583_v35, %v582_v30  ;;  %v589_v3 = vshrl.u32 %v4218_v49, %v580_v51  ;;  %v591_v31 = vshll.u32 %v4218_v49, %v579_v39  ;;  %v516_v57 = vsel %vm514_vm12, %v515_v55, %v3649_v10 }
 0x138   :  { %v1174_v8 = vxor.u32 2147483648, %v1169_v63  ;;  %v592_v45 = vshrl.u32 %v4219_v25, %v580_v51  ;;  %v595_v4 = vshrl.u32 %v4220_v26, %v580_v51  ;;  %v517_v28 = vclz %v516_v57 }
 0x139   :  { %v536_v37 = vsel %vm413_vm3, %v535_v20, %v511_v22  ;;  %v587_v56 = vor.u32 %v586_v15, %v585_v33  ;;  %v594_v32 = vshll.u32 %v4219_v25, %v579_v39  ;;  %v1178_v0 = vsel %vm1176_vm5, %v1177_v7, %v1169_v63 }
 0x13a   :  { %v1175_v36 = vsel %vm1173_vm4, %v1161_v23, %v1174_v8  ;;  %v2429_v35 = vsel %vm2427_vm6, %v1161_v23, %v1174_v8  ;;  %v2432_v16 = vsel %vm2430_vm7, %v1177_v7, %v1169_v63  ;;  %v2801_v30 = vadd.s32 4294967294, %v517_v28 }
 0x13b   :  { %v1179_v51 = vsel %vm1172_vm8, %v1175_v36, %v1178_v0  ;;  %v2433_v22 = vsel %vm2426_vm9, %v2429_v35, %v2432_v16  ;;  %v590_v39 = vor.u32 %v589_v3, %v588_v47  ;;  %v593_v15 = vor.u32 %v592_v45, %v591_v31 }
 0x13c   :  { %v1180_v20 = vsel %vm1170_vm10, nan, %v1179_v51  ;;  %v2434_v33 = vsel %vm1170_vm10, nan, %v2433_v22  ;;  %v596_v55 = vor.u32 %v595_v4, %v594_v32  ;;  %vm2802_vm14 = vcmp.lt.s32.totalorder %v2801_v30, 0 }
 0x13d   :  { %v1494_v23 = vmul.f32 %v2877_v44, %v1180_v20  ;;  %v2750_v8 = vmul.f32 %v2877_v44, %v2434_v33  ;;  %v538_v12 = vsel %vm3645_vm11, 0, %v536_v37  ;;  %v520_v63 = vsel %vm2802_vm14, 0, %v2801_v30 }
 0x13e   :  { %vm598_vm15 = vcmp.lt.s32.totalorder %v3633_v54, 2  ;;  %vm599_vm0 = vcmp.lt.s32.totalorder %v3633_v54, 3  ;;  %vm600_vm1 = vcmp.lt.s32.totalorder %v3633_v54, 4  ;;  %v521_v21 = vsub.s32 32, %v520_v63 }
 0x13f   :  { %1502 = vst [vmem:[#allocation2 + $0x28] sm:$0xff] %v1494_v23  ;;  %v525_v47 = vsub.s32 4294967266, %v520_v63  ;;  %v602_v17 = vsel %vm600_vm1, %v590_v39, 2102212464  ;;  %v605_v7 = vsel %vm597_vm13, %v584_v13, %v587_v56  ;;  %v522_v44 = vshll.u32 %v3649_v10, %v520_v63 }
 0x140   :  { %2758 = vst [vmem:[#allocation4 + $0x28] sm:$0xff] %v2750_v8  ;;  %v606_v3 = vsel %vm600_vm1, %v593_v15, 920167782  ;;  %v609_v31 = vsel %vm597_vm13, %v587_v56, %v590_v39  ;;  %v610_v57 = vsel %vm600_vm1, %v596_v55, 1326507024  ;;  %v523_v45 = vshrl.u32 %v3626_v38, %v521_v21 }
 0x141   :  { %v526_v4 = vadd.s32 127, %v525_v47  ;;  %v607_v28 = vsel %vm599_vm0, %v590_v39, %v606_v3  ;;  %v611_v37 = vsel %vm599_vm0, %v593_v15, %v610_v57  ;;  %v601_v32 = vsel %vm597_vm13, %v581_v19, %v584_v13 }
 0x142   :  { %v603_v10 = vsel %vm599_vm0, %v587_v56, %v602_v17  ;;  %v608_v36 = vsel %vm598_vm15, %v605_v7, %v607_v28  ;;  %v612_v0 = vsel %vm598_vm15, %v609_v31, %v611_v37  ;;  %v524_v38 = vor.u32 %v523_v45, %v522_v44 }
 0x143   :  { %v527_v35 = vshll.u32 %v526_v4, 23  ;;  %v616_v16 = vand.u32 65535, %v612_v0  ;;  %v617_v51 = vshrl.u32 %v612_v0, 16  ;;  %v638_v22 = vand.u32 65535, %v608_v36 }
 0x144   :  { %v639_v30 = vshrl.u32 %v608_v36, 16  ;;  %v2815_v39 = vadd.s32 4294967169, %v3641_v43  ;;  %v3712_v19 = vand.u32 8388607, %v1181_v50  ;;  %v3714_v56 = vand.u32 3, %v538_v12 }
 0x145   :  { %v528_v13 = vor.u32 4788187, %v527_v35  ;;  %v1804_v20 = vadd.s32 3, %v538_v12  ;;  %v619_v33 = vmul.u32 %v617_v51, %v3629_v46  ;;  %v531_v15 = vcvt.s32.f32 %v524_v38 }
 0x146   :  { %v3719_v55 = vsel %vm598_vm15, %v601_v32, %v603_v10  ;;  %v620_v23 = vmul.u32 %v616_v16, %v3638_v58  ;;  %v641_v8 = vmul.u32 %v639_v30, %v3629_v46  ;;  %v618_v63 = vmul.u32 %v616_v16, %v3629_v46 }
 0x147   :  { %v529_v43 = vand.u32 2147483647, %v528_v13  ;;  %v622_v21 = vshll.u32 %v619_v33, 16  ;;  %v642_v47 = vmul.u32 %v638_v22, %v3638_v58  ;;  %v621_v17 = vmul.u32 %v617_v51, %v3638_v58 }
 0x148   :  { %v640_v12 = vmul.u32 %v638_v22, %v3629_v46  ;;  %v644_v7 = vshll.u32 %v641_v8, 16  ;;  %v1191_v44 = vadd.s32 1, %v2815_v39  ;;  %v624_v54 = vshll.u32 %v620_v23, 16 }
 0x149   :  { %v532_v3 = vmul.f32 %v531_v15, %v529_v43  ;;  %vm626_vm2 = vc.u32 %v618_v63, %v622_v21  ;;  %v628_v31 = vadd.s32 %v622_v21, %v618_v63  ;;  %v643_v45 = vmul.u32 %v639_v30, %v3638_v58 }
 0x14a   :  { %v627_v57 = vsel %vm626_vm2, 1, %v4221_v41  ;;  %v646_v4 = vshll.u32 %v642_v47, 16  ;;  %vm648_vm4 = vc.u32 %v640_v12, %v644_v7  ;;  %v650_v46 = vadd.s32 %v644_v7, %v640_v12 }
 0x14b   :  { %v533_v28 = vxor.u32 2147483648, %v532_v3  ;;  %v629_v37 = vadd.s32 %v627_v57, %v621_v17  ;;  %vm630_vm5 = vc.u32 %v628_v31, %v624_v54  ;;  %v649_v32 = vsel %vm648_vm4, 1, %v4221_v41 }
 0x14c   :  { %v631_v10 = vsel %vm630_vm5, 1, %v4221_v41  ;;  %v651_v36 = vadd.s32 %v649_v32, %v643_v45  ;;  %vm1192_vm6 = vcmp.gt.s32.totalorder %v1191_v44, 0  ;;  %v623_v38 = vshrl.u32 %v619_v33, 16 }
 0x14d   :  { %v534_v0 = vsel %vm413_vm3, %v533_v28, %v532_v3  ;;  %v633_v35 = vadd.s32 %v631_v10, %v629_v37  ;;  %v1193_v16 = vsel %vm1192_vm6, %v1191_v44, 0  ;;  %v3738_v51 = vand.u32 3, %v1804_v20 }
 0x14e   :  { %v3736_v58 = vsel %vm3645_vm11, %v3339_v59, %v534_v0  ;;  %v625_v22 = vshrl.u32 %v620_v23, 16  ;;  %vm652_vm7 = vc.u32 %v650_v46, %v646_v4  ;;  %v1195_v15 = vand.u32 31, %v1193_v16 }
 0x14f   :  { %v539_v30 = vmul.f32 %v3736_v58, %v3736_v58  ;;  %v634_v39 = vadd.s32 %v633_v35, %v623_v38  ;;  %v653_v13 = vsel %vm652_vm7, 1, %v4221_v41  ;;  %v645_v43 = vshrl.u32 %v641_v8, 16 }
 0x150   :  { %v655_v33 = vadd.s32 %v653_v13, %v651_v36  ;;  %v658_v63 = vmul.u32 %v3614_v40, %v3719_v55  ;;  %v1189_v6 = vor.u32 8388608, %v3712_v19  ;;  %v3748_v23 = vsub.s32 32, %v1195_v15 }
 0x151   :  { %v540_v21 = vmul.f32 -0.001358992, %v539_v30  ;;  %v547_v17 = vmul.f32 -0.00019511016, %v539_v30  ;;  %v3746_v20 = vadd.s32 %v634_v39, %v625_v22  ;;  %v647_v12 = vshrl.u32 %v642_v47, 16 }
 0x152   :  { %v3750_v7 = vadd.s32 %v650_v46, %v646_v4  ;;  %v656_v44 = vadd.s32 %v655_v33, %v645_v43  ;;  %v3752_v3 = vshrl.u32 %v1193_v16, 5  ;;  %v1198_v31 = vshll.u32 %v2948_v24, %v1195_v15 }
 0x153   :  { %v541_v54 = vadd.f32 0.041655596, %v540_v21  ;;  %v548_v8 = vadd.f32 0.008332121, %v547_v17  ;;  %v1201_v40 = vshll.u32 %v4222_v14, %v1195_v15  ;;  %v1199_v19 = vshrl.u32 %v4222_v14, %v3748_v23 }
 0x154   :  { %v657_v55 = vadd.s32 %v656_v44, %v647_v12  ;;  %v1202_v57 = vshrl.u32 %v4223_v5, %v3748_v23  ;;  %v1204_v47 = vshll.u32 %v4223_v5, %v1195_v15  ;;  %vm660_vm3 = vc.u32 %v3746_v20, %v3750_v7 }
 0x155   :  { %v542_v45 = vmul.f32 %v541_v54, %v539_v30  ;;  %v549_v4 = vmul.f32 %v548_v8, %v539_v30  ;;  %v1205_v28 = vshrl.u32 %v4218_v49, %v3748_v23  ;;  %v3765_v32 = vor.u32 %v1199_v19, %v1198_v31 }
 0x156   :  { %v661_v37 = vadd.s32 1, %v657_v55  ;;  %v1207_v10 = vshll.u32 %v4218_v49, %v1195_v15  ;;  %v1208_v46 = vshrl.u32 %v4219_v25, %v3748_v23  ;;  %v3770_v38 = vor.u32 %v1202_v57, %v1201_v40 }
 0x157   :  { %v543_v36 = vadd.f32 -0.4999988, %v542_v45  ;;  %v550_v0 = vadd.f32 -0.16666654, %v549_v4  ;;  %v3772_v35 = vor.u32 %v1205_v28, %v1204_v47  ;;  %vm557_vm8 = vcmp.eq.s32.totalorder %v3714_v56, 0 }
 0x158   :  { %v662_v16 = vsel %vm660_vm3, %v661_v37, %v657_v55  ;;  %v1209_v22 = vor.u32 %v1208_v46, %v1207_v10  ;;  %v1210_v39 = vshll.u32 %v4219_v25, %v1195_v15  ;;  %v1211_v13 = vshrl.u32 %v4220_v26, %v3748_v23 }
 0x159   :  { %v544_v43 = vmul.f32 %v543_v36, %v539_v30  ;;  %v551_v33 = vmul.f32 %v550_v0, %v539_v30  ;;  %vm556_vm9 = vcmp.lt.s32.totalorder %v3714_v56, 2  ;;  %v663_v21 = vadd.s32 %v662_v16, %v658_v63 }
 0x15a   :  { %vm1216_vm10 = vcmp.lt.s32.totalorder %v3752_v3, 4  ;;  %vm554_vm11 = vweird.f32 %v3339_v59  ;;  %v1212_v17 = vor.u32 %v1211_v13, %v1210_v39  ;;  %vm1213_vm12 = vcmp.lt.s32.totalorder %v3752_v3, 1 }
 0x15b   :  { %vm1215_vm13 = vcmp.lt.s32.totalorder %v3752_v3, 3  ;;  %v1222_v15 = vsel %vm1216_vm10, %v1209_v22, 920167782  ;;  %v545_v12 = vadd.f32 1.0, %v544_v43  ;;  %v552_v44 = vadd.f32 1.0, %v551_v33 }
 0x15c   :  { %v664_v54 = vadd.s32 536870912, %v663_v21  ;;  %v1221_v30 = vsel %vm1213_vm12, %v3765_v32, %v3770_v38  ;;  %vm1214_vm14 = vcmp.lt.s32.totalorder %v3752_v3, 2  ;;  %v1223_v63 = vsel %vm1215_vm13, %v3772_v35, %v1222_v15 }
 0x15d   :  { %v1226_v8 = vsel %vm1216_vm10, %v1212_v17, 1326507024  ;;  %v3795_v31 = vshll.u32 %v1189_v6, 8  ;;  %v553_v40 = vmul.f32 %v552_v44, %v3736_v58  ;;  %v561_v55 = vxor.u32 2147483648, %v545_v12  ;;  %v2891_v44 = vld [vmem:[%s4198_s1] ss:$0 sm:$0xff] }
 0x15e   :  { %v3798_v19 = vshrl.u32 %v664_v54, 30  ;;  %v1225_v57 = vsel %vm1213_vm12, %v3770_v38, %v3772_v35  ;;  %vm560_vm15 = vcmp.eq.s32.totalorder %v3714_v56, 2  ;;  %vm1806_vm0 = vcmp.lt.s32.totalorder %v3738_v51, 2 }
 0x15f   :  { %v3808_v47 = vsel %vm1214_vm14, %v1221_v30, %v1223_v63  ;;  %v1227_v6 = vsel %vm1215_vm13, %v1209_v22, %v1226_v8  ;;  %v558_v58 = vxor.u32 2147483648, %v553_v40  ;;  %vm1807_vm1 = vcmp.eq.s32.totalorder %v3738_v51, 0 }
 0x160   :  { %vm1810_vm2 = vcmp.eq.s32.totalorder %v3738_v51, 2  ;;  %v666_v45 = vshll.u32 %v3798_v19, 30  ;;  %v562_v4 = vsel %vm560_vm15, %v561_v55, %v553_v40  ;;  %v1228_v37 = vsel %vm1214_vm14, %v1225_v57, %v1227_v6 }
 0x161   :  { %v1812_v28 = vsel %vm1810_vm2, %v561_v55, %v553_v40  ;;  %v1230_v10 = vand.u32 65535, %v3795_v31  ;;  %v559_v46 = vsel %vm557_vm8, %v545_v12, %v558_v58  ;;  %v1809_v36 = vsel %vm1807_vm1, %v545_v12, %v558_v58 }
 0x162   :  { %v3820_v0 = vsub.s32 %v663_v21, %v666_v45  ;;  %v1255_v16 = vshrl.u32 %v3808_v47, 16  ;;  %v563_v22 = vsel %vm556_vm9, %v559_v46, %v562_v4  ;;  %v1813_v39 = vsel %vm1806_vm0, %v1809_v36, %v1812_v28 }
 0x163   :  { %v1232_v13 = vand.u32 65535, %v1228_v37  ;;  %v1233_v43 = vshrl.u32 %v1228_v37, 16  ;;  %v564_v33 = vsel %vm554_vm11, nan, %v563_v22  ;;  %v1814_v17 = vsel %vm554_vm11, nan, %v1813_v39  ;;  %v226_v37 = vpop.permute.xlu1 %225 }
 0x164   :  { %vm668_vm4 = vcmp.lt.s32.totalorder %v3820_v0, 0  ;;  %v669_v21 = vsub.s32 0, %v3820_v0  ;;  %v174_v15 = vmul.f32 %v3257_v53, %v3257_v53  ;;  %v1490_v56 = vmul.f32 %v3652_v2, %v564_v33  ;;  %v2892_v53 = vld [vmem:[%s4198_s1 + $0x1] ss:$0 sm:$0xff]  ;;  %s2954_s1 = smov [#allocation2]  }
 0x165   :  { %v2746_v51 = vmul.f32 %v3652_v2, %v1814_v17  ;;  %v1231_v12 = vshrl.u32 %v3795_v31, 16  ;;  %v73_v59 = vmul.f32 %v2891_v44, %v3005_v11  ;;  %v76_v54 = vmul.f32 %v2891_v44, %v3049_v48  ;;  %s4187_s20 = sshll.u32 %s2954_s1, 4  ;;  %s2766_s20 = int_to_ptr.vmem [resolvable:$true] %s4187_s20 }
 0x166   :  { %v670_v30 = vsel %vm668_vm4, %v669_v21, %v3820_v0  ;;  %v1235_v63 = vmul.u32 %v1233_v43, %v1230_v10  ;;  %v114_v8 = vmul.f32 %v2892_v53, %v3113_v60  ;;  %v3850_v2 = vmul.f32 %v3526_v29, %v3618_v42  ;;  %1498 = vst [vmem:[#allocation2 + $0x8] sm:$0xff] %v1490_v56 }
 0x167   :  { %v671_v40 = vclz %v670_v30  ;;  %v1236_v55 = vmul.u32 %v1232_v13, %v1231_v12  ;;  %v117_v11 = vmul.f32 %v2892_v53, %v3226_v1  ;;  %2754 = vst [vmem:[#allocation4 + $0x8] sm:$0xff] %v2746_v51  ;;  %v1197_v48 = vshrl.u32 %v2948_v24, %v3748_v23 }
 0x168   :  { %v1254_v57 = vand.u32 65535, %v3808_v47  ;;  %v1257_v6 = vmul.u32 %v1255_v16, %v1230_v10  ;;  %v3857_v58 = vmul.f32 %v3526_v29, %v174_v15  ;;  %v1234_v45 = vmul.u32 %v1232_v13, %v1230_v10 }
 0x169   :  { %v2804_v60 = vadd.s32 4294967294, %v671_v40  ;;  %v1238_v4 = vshll.u32 %v1235_v63, 16  ;;  %v659_v42 = vadd.s32 %v3750_v7, %v3746_v20  ;;  %v1217_v1 = vsel %vm1213_vm12, %v1197_v48, %v3765_v32 }
 0x16a   :  { %v1218_v23 = vsel %vm1216_vm10, %v3772_v35, 2102212464  ;;  %v1237_v28 = vmul.u32 %v1233_v43, %v1231_v12  ;;  %v1240_v47 = vshll.u32 %v1236_v55, 16  ;;  %v1258_v22 = vmul.u32 %v1254_v57, %v1231_v12 }
 0x16b   :  { %vm2805_vm5 = vcmp.lt.s32.totalorder %v2804_v60, 0  ;;  %vm1242_vm6 = vc.u32 %v1234_v45, %v1238_v4  ;;  %v1244_v29 = vadd.s32 %v1238_v4, %v1234_v45  ;;  %v1260_v39 = vshll.u32 %v1257_v6, 16 }
 0x16c   :  { %v674_v46 = vsel %vm2805_vm5, 0, %v2804_v60  ;;  %v1243_v36 = vsel %vm1242_vm6, 1, %v4221_v41  ;;  %v1256_v33 = vmul.u32 %v1254_v57, %v1230_v10  ;;  %v1239_v17 = vshrl.u32 %v1235_v63, 16 }
 0x16d   :  { %v675_v20 = vsub.s32 32, %v674_v46  ;;  %v679_v7 = vsub.s32 4294967266, %v674_v46  ;;  %v1245_v13 = vadd.s32 %v1243_v36, %v1237_v28  ;;  %v676_v32 = vshll.u32 %v3820_v0, %v674_v46 }
 0x16e   :  { %vm1246_vm7 = vc.u32 %v1244_v29, %v1240_v47  ;;  %v1259_v35 = vmul.u32 %v1255_v16, %v1231_v12  ;;  %vm567_vm3 = vcmp.lt.s32.totalorder %v3553_v18, 0  ;;  %vm1264_vm8 = vc.u32 %v1256_v33, %v1260_v39 }
 0x16f   :  { %v677_v43 = vshrl.u32 %v659_v42, %v675_v20  ;;  %v680_v21 = vadd.s32 127, %v679_v7  ;;  %v1247_v15 = vsel %vm1246_vm7, 1, %v4221_v41  ;;  %v1262_v51 = vshll.u32 %v1258_v22, 16 }
 0x170   :  { %v1249_v56 = vadd.s32 %v1247_v15, %v1245_v13  ;;  %v1265_v44 = vsel %vm1264_vm8, 1, %v4221_v41  ;;  %v1266_v30 = vadd.s32 %v1260_v39, %v1256_v33  ;;  %v1219_v10 = vsel %vm1215_vm13, %v3770_v38, %v1218_v23  ;;  %v238_v23 = vpop.permute.xlu1 %237 }
 0x171   :  { %v678_v53 = vor.u32 %v677_v43, %v676_v32  ;;  %v681_v40 = vshll.u32 %v680_v21, 23  ;;  %v1267_v0 = vadd.s32 %v1265_v44, %v1259_v35  ;;  %v689_v16 = vsub.s32 4, %v3798_v19 }
 0x172   :  { %v1250_v12 = vadd.s32 %v1249_v56, %v1239_v17  ;;  %vm1268_vm9 = vc.u32 %v1266_v30, %v1262_v51  ;;  %v122_v63 = vadd.f32 %v114_v8, %v73_v59  ;;  %v1241_v57 = vshrl.u32 %v1236_v55, 16 }
 0x173   :  { %v682_v48 = vor.u32 4788187, %v681_v40  ;;  %v1269_v60 = vsel %vm1268_vm9, 1, %v4221_v41  ;;  %v125_v45 = vadd.f32 %v117_v11, %v76_v54  ;;  %v1261_v4 = vshrl.u32 %v1257_v6, 16 }
 0x174   :  { %v1271_v42 = vadd.s32 %v1269_v60, %v1267_v0  ;;  %v154_v28 = vmul.f32 %v122_v63, %v122_v63  ;;  %v244_v47 = vmul.f32 %v226_v37, %v122_v63  ;;  %v685_v46 = vcvt.s32.f32 %v678_v53 }
 0x175   :  { %v683_v29 = vand.u32 2147483647, %v682_v48  ;;  %v3877_v36 = vadd.s32 %v1250_v12, %v1241_v57  ;;  %v157_v38 = vmul.f32 %v125_v45, %v125_v45  ;;  %v1220_v39 = vsel %vm1214_vm14, %v1217_v1, %v1219_v10 }
 0x176   :  { %v1263_v20 = vshrl.u32 %v1258_v22, 16  ;;  %v1272_v59 = vadd.s32 %v1271_v42, %v1261_v4  ;;  %v163_v8 = vmul.f32 %v3584_v62, %v154_v28  ;;  %v3882_v7 = vadd.s32 %v1266_v30, %v1262_v51 }
 0x177   :  { %v686_v55 = vmul.f32 %v685_v46, %v683_v29  ;;  %v3885_v54 = vadd.f32 %v3550_v61, %v244_v47  ;;  %v166_v11 = vmul.f32 %v3584_v62, %v157_v38  ;;  %v690_v6 = vsel %vm567_vm3, %v689_v16, %v3798_v19 }
 0x178   :  { %v1273_v37 = vadd.s32 %v1272_v59, %v1263_v20  ;;  %v3892_v3 = vadd.f32 %v3850_v2, %v163_v8  ;;  %v247_v1 = vmul.f32 %v238_v23, %v125_v45  ;;  %v196_v22 = vmul.f32 1.442695, %v3473_v27 }
 0x179   :  { %v687_v13 = vxor.u32 2147483648, %v686_v55  ;;  %vm1276_vm10 = vc.u32 %v3877_v36, %v3882_v7  ;;  %v876_v33 = vand.u32 2139095040, %v3885_v54  ;;  %vm566_vm11 = vcmp.le.f32.partialorder %v565_v52, 0.7853982 }
 0x17a   :  { %v1277_v62 = vadd.s32 1, %v1273_v37  ;;  %v873_v32 = vand.u32 2147483647, %v3885_v54  ;;  %v3902_v19 = vadd.f32 %v3857_v58, %v166_v11  ;;  %v692_v17 = vsel %vm566_vm11, 0, %v690_v6 }
 0x17b   :  { %v688_v2 = vsel %vm567_vm3, %v687_v13, %v686_v55  ;;  %v1274_v27 = vmul.u32 %v3795_v31, %v1220_v39  ;;  %v877_v35 = vshrl.u32 %v876_v33, 23  ;;  %v3911_v15 = vadd.f32 %v3550_v61, %v247_v1 }
 0x17c   :  { %v3908_v43 = vsel %vm566_vm11, %v3553_v18, %v688_v2  ;;  %v1278_v21 = vsel %vm1276_vm10, %v1277_v62, %v1273_v37  ;;  %2880 = vpow2.f32 %v196_v22  ;;  %v1959_v51 = vadd.s32 3, %v692_v17 }
 0x17d   :  { %v693_v52 = vmul.f32 %v3908_v43, %v3908_v43  ;;  %v1279_v56 = vadd.s32 %v1278_v21, %v1274_v27  ;;  %v2809_v58 = vadd.s32 4294967169, %v877_v35  ;;  %v880_v44 = vand.u32 8388607, %v873_v32 }
 0x17e   :  { %v3917_v10 = vand.u32 3, %v692_v17  ;;  %v204_v0 = vmul.f32 1.442695, %v3603_v34  ;;  %vm1183_vm12 = vcmp.lt.s32.totalorder %v3608_v9, 0  ;;  %v1338_v61 = vand.u32 2139095040, %v3911_v15 }
 0x17f   :  { %v694_v30 = vmul.f32 -0.001358992, %v693_v52  ;;  %v701_v31 = vmul.f32 -0.00019511016, %v693_v52  ;;  %v1280_v53 = vadd.s32 536870912, %v1279_v56  ;;  %v883_v40 = vadd.s32 1, %v2809_v58 }
 0x180   :  { %v3922_v48 = vand.u32 3, %v1959_v51  ;;  %vm3926_vm14 = vcmp.le.f32.partialorder %v1181_v50, 0.7853982  ;;  %v881_v60 = vor.u32 8388608, %v880_v44  ;;  %2882 = vpow2.f32 %v204_v0 }
 0x181   :  { %v695_v16 = vadd.f32 0.041655596, %v694_v30  ;;  %v702_v12 = vadd.f32 0.008332121, %v701_v31  ;;  %v1281_v63 = vshrl.u32 %v1280_v53, 30  ;;  %vm884_vm13 = vcmp.gt.s32.totalorder %v883_v40, 0 }
 0x182   :  { %v885_v45 = vsel %vm884_vm13, %v883_v40, 0  ;;  %v3930_v47 = vpop.eup %2880  ;;  %v1335_v46 = vand.u32 2147483647, %v3911_v15  ;;  %v1339_v38 = vshrl.u32 %v1338_v61, 23  ;;  %vm714_vm15 = vcmp.eq.s32.totalorder %v3917_v10, 2 }
 0x183   :  { %v696_v4 = vmul.f32 %v695_v16, %v693_v52  ;;  %v703_v34 = vmul.f32 %v702_v12, %v693_v52  ;;  %v1282_v42 = vshll.u32 %v1281_v63, 30  ;;  %v1305_v28 = vsub.s32 4, %v1281_v63 }
 0x184   :  { %v3932_v29 = vand.u32 31, %v885_v45  ;;  %vm711_vm0 = vcmp.eq.s32.totalorder %v3917_v10, 0  ;;  %vm1962_vm1 = vcmp.eq.s32.totalorder %v3922_v48, 0  ;;  %v3943_v8 = vshll.u32 %v881_v60, 8 }
 0x185   :  { %v697_v23 = vadd.f32 -0.4999988, %v696_v4  ;;  %v704_v39 = vadd.f32 -0.16666654, %v703_v34  ;;  %v3936_v50 = vsub.s32 %v1279_v56, %v1282_v42  ;;  %v1306_v20 = vsel %vm1183_vm12, %v1305_v28, %v1281_v63 }
 0x186   :  { %v888_v59 = vsub.s32 32, %v3932_v29  ;;  %vm710_vm2 = vcmp.lt.s32.totalorder %v3917_v10, 2  ;;  %vm1961_vm4 = vcmp.lt.s32.totalorder %v3922_v48, 2  ;;  %vm708_vm6 = vweird.f32 %v3553_v18  ;;  %v3959_v17 = vpop.eup %2882 }
 0x187   :  { %v698_v55 = vmul.f32 %v697_v23, %v693_v52  ;;  %v705_v11 = vmul.f32 %v704_v39, %v693_v52  ;;  %vm1284_vm5 = vcmp.lt.s32.totalorder %v3936_v50, 0  ;;  %v1285_v6 = vsub.s32 0, %v3936_v50 }
 0x188   :  { %vm1965_vm7 = vcmp.eq.s32.totalorder %v3922_v48, 2  ;;  %v1275_v37 = vadd.s32 %v3882_v7, %v3877_v36  ;;  %v2818_v1 = vadd.s32 4294967169, %v1339_v38  ;;  %v3955_v22 = vand.u32 8388607, %v1335_v46 }
 0x189   :  { %v699_v13 = vadd.f32 1.0, %v698_v55  ;;  %v706_v33 = vadd.f32 1.0, %v705_v11  ;;  %v1286_v62 = vsel %vm1284_vm5, %v1285_v6, %v3936_v50  ;;  %v891_v2 = vshrl.u32 %v4222_v14, %v888_v59 }
 0x18a   :  { %v1287_v27 = vclz %v1286_v62  ;;  %v3963_v35 = vsel %vm3926_vm14, 0, %v1306_v20  ;;  %v894_v36 = vshrl.u32 %v4223_v5, %v888_v59  ;;  %v3967_v7 = vand.u32 65535, %v3943_v8 }
 0x18b   :  { %v707_v21 = vmul.f32 %v706_v33, %v3908_v43  ;;  %v715_v52 = vxor.u32 2147483648, %v699_v13  ;;  %v3970_v56 = vshrl.u32 %v885_v45, 5  ;;  %v890_v58 = vshll.u32 %v2948_v24, %v3932_v29 }
 0x18c   :  { %v2816_v51 = vadd.s32 4294967294, %v1287_v27  ;;  %v893_v44 = vshll.u32 %v4222_v14, %v3932_v29  ;;  %v897_v30 = vshrl.u32 %v4218_v49, %v888_v59  ;;  %v1345_v31 = vadd.s32 1, %v2818_v1 }
 0x18d   :  { %v712_v53 = vxor.u32 2147483648, %v707_v21  ;;  %v2579_v40 = vadd.s32 3, %v3963_v35  ;;  %v892_v0 = vor.u32 %v891_v2, %v890_v58  ;;  %v896_v43 = vshll.u32 %v4223_v5, %v3932_v29 }
 0x18e   :  { %v716_v61 = vsel %vm714_vm15, %v715_v52, %v707_v21  ;;  %v1967_v16 = vsel %vm1965_vm7, %v715_v52, %v707_v21  ;;  %vm2817_vm3 = vcmp.lt.s32.totalorder %v2816_v51, 0  ;;  %v895_v12 = vor.u32 %v894_v36, %v893_v44 }
 0x18f   :  { %v713_v63 = vsel %vm711_vm0, %v699_v13, %v712_v53  ;;  %v1964_v60 = vsel %vm1962_vm1, %v699_v13, %v712_v53  ;;  %v1290_v45 = vsel %vm2817_vm3, 0, %v2816_v51  ;;  %v898_v4 = vor.u32 %v897_v30, %v896_v43 }
 0x190   :  { %v717_v34 = vsel %vm710_vm2, %v713_v63, %v716_v61  ;;  %v1968_v42 = vsel %vm1961_vm4, %v1964_v60, %v1967_v16  ;;  %v1291_v28 = vsub.s32 32, %v1290_v45  ;;  %v899_v38 = vshll.u32 %v4218_v49, %v3932_v29 }
 0x191   :  { %v718_v23 = vsel %vm708_vm6, nan, %v717_v34  ;;  %v1969_v39 = vsel %vm708_vm6, nan, %v1968_v42  ;;  %v1295_v20 = vsub.s32 4294967266, %v1290_v45  ;;  %v900_v55 = vshrl.u32 %v4219_v25, %v888_v59 }
 0x192   :  { %v1491_v11 = vmul.f32 %v3930_v47, %v718_v23  ;;  %v2747_v10 = vmul.f32 %v3930_v47, %v1969_v39  ;;  %v1292_v48 = vshll.u32 %v3936_v50, %v1290_v45  ;;  %v1293_v6 = vshrl.u32 %v1275_v37, %v1291_v28 }
 0x193   :  { %v1296_v1 = vadd.s32 127, %v1295_v20  ;;  %v901_v13 = vor.u32 %v900_v55, %v899_v38  ;;  %v902_v33 = vshll.u32 %v4219_v25, %v3932_v29  ;;  %v903_v62 = vshrl.u32 %v4220_v26, %v888_v59 }
 0x194   :  { %1499 = vst [vmem:[#allocation2 + $0x10] sm:$0xff] %v1491_v11  ;;  %v1294_v18 = vor.u32 %v1293_v6, %v1292_v48  ;;  %v889_v2 = vshrl.u32 %v2948_v24, %v888_v59  ;;  %vm905_vm8 = vcmp.lt.s32.totalorder %v3970_v56, 1  ;;  %vm908_vm9 = vcmp.lt.s32.totalorder %v3970_v56, 4 }
 0x195   :  { %2755 = vst [vmem:[#allocation4 + $0x10] sm:$0xff] %v2747_v10  ;;  %v1297_v47 = vshll.u32 %v1296_v1, 23  ;;  %v904_v27 = vor.u32 %v903_v62, %v902_v33  ;;  %vm906_vm10 = vcmp.lt.s32.totalorder %v3970_v56, 2  ;;  %v910_v50 = vsel %vm908_vm9, %v898_v4, 2102212464 }
 0x196   :  { %vm907_vm11 = vcmp.lt.s32.totalorder %v3970_v56, 3  ;;  %v909_v29 = vsel %vm905_vm8, %v889_v2, %v892_v0  ;;  %v913_v37 = vsel %vm905_vm8, %v892_v0, %v895_v12  ;;  %v914_v36 = vsel %vm908_vm9, %v901_v13, 920167782 }
 0x197   :  { %v1298_v59 = vor.u32 4788187, %v1297_v47  ;;  %v911_v21 = vsel %vm907_vm11, %v895_v12, %v910_v50  ;;  %v915_v52 = vsel %vm907_vm11, %v898_v4, %v914_v36  ;;  %v917_v58 = vsel %vm905_vm8, %v895_v12, %v898_v4 }
 0x198   :  { %v1301_v51 = vcvt.s32.f32 %v1294_v18  ;;  %v916_v44 = vsel %vm906_vm10, %v913_v37, %v915_v52  ;;  %v918_v30 = vsel %vm908_vm9, %v904_v27, 1326507024  ;;  %vm1346_vm13 = vcmp.gt.s32.totalorder %v1345_v31, 0 }
 0x199   :  { %v1299_v53 = vand.u32 2147483647, %v1298_v59  ;;  %v919_v43 = vsel %vm907_vm11, %v901_v13, %v918_v30  ;;  %v946_v61 = vand.u32 65535, %v916_v44  ;;  %v947_v16 = vshrl.u32 %v916_v44, 16 }
 0x19a   :  { %v4020_v0 = vsel %vm906_vm10, %v909_v29, %v911_v21  ;;  %v920_v63 = vsel %vm906_vm10, %v917_v58, %v919_v43  ;;  %v923_v12 = vshrl.u32 %v3943_v8, 16  ;;  %v1343_v60 = vor.u32 8388608, %v3955_v22 }
 0x19b   :  { %v1302_v45 = vmul.f32 %v1301_v51, %v1299_v53  ;;  %v924_v4 = vand.u32 65535, %v920_v63  ;;  %v925_v34 = vshrl.u32 %v920_v63, 16  ;;  %v1347_v42 = vsel %vm1346_vm13, %v1345_v31, 0 }
 0x19c   :  { %v4027_v28 = vand.u32 3, %v3963_v35  ;;  %v4029_v38 = vand.u32 3, %v2579_v40  ;;  %v949_v23 = vmul.u32 %v947_v16, %v3967_v7  ;;  %v950_v39 = vmul.u32 %v946_v61, %v923_v12 }
 0x19d   :  { %v1303_v20 = vxor.u32 2147483648, %v1302_v45  ;;  %v927_v56 = vmul.u32 %v925_v34, %v3967_v7  ;;  %v928_v55 = vmul.u32 %v924_v4, %v923_v12  ;;  %v966_v11 = vmul.u32 %v3943_v8, %v4020_v0 }
 0x19e   :  { %v948_v10 = vmul.u32 %v946_v61, %v3967_v7  ;;  %v951_v48 = vmul.u32 %v947_v16, %v923_v12  ;;  %v952_v6 = vshll.u32 %v949_v23, 16  ;;  %v4036_v31 = vshrl.u32 %v1347_v42, 5 }
 0x19f   :  { %v1304_v35 = vsel %vm1183_vm12, %v1303_v20, %v1302_v45  ;;  %v926_v40 = vmul.u32 %v924_v4, %v3967_v7  ;;  %v929_v1 = vmul.u32 %v925_v34, %v923_v12  ;;  %v930_v13 = vshll.u32 %v927_v56, 16 }
 0x1a0   :  { %v4044_v33 = vsel %vm3926_vm14, %v3608_v9, %v1304_v35  ;;  %v932_v62 = vshll.u32 %v928_v55, 16  ;;  %v954_v18 = vshll.u32 %v950_v39, 16  ;;  %vm956_vm15 = vc.u32 %v948_v10, %v952_v6 }
 0x1a1   :  { %v1309_v2 = vmul.f32 %v4044_v33, %v4044_v33  ;;  %vm934_vm0 = vc.u32 %v926_v40, %v930_v13  ;;  %v936_v47 = vadd.s32 %v930_v13, %v926_v40  ;;  %v957_v27 = vsel %vm956_vm15, 1, %v4221_v41 }
 0x1a2   :  { %v935_v50 = vsel %vm934_vm0, 1, %v4221_v41  ;;  %v958_v7 = vadd.s32 %v952_v6, %v948_v10  ;;  %v959_v29 = vadd.s32 %v957_v27, %v951_v48  ;;  %v1349_v37 = vand.u32 31, %v1347_v42 }
 0x1a3   :  { %v1310_v36 = vmul.f32 -0.001358992, %v1309_v2  ;;  %v1317_v59 = vmul.f32 -0.00019511016, %v1309_v2  ;;  %v937_v57 = vadd.s32 %v935_v50, %v929_v1  ;;  %vm938_vm12 = vc.u32 %v936_v47, %v932_v62 }
 0x1a4   :  { %v931_v21 = vshrl.u32 %v927_v56, 16  ;;  %v939_v52 = vsel %vm938_vm12, 1, %v4221_v41  ;;  %vm960_vm14 = vc.u32 %v958_v7, %v954_v18  ;;  %v4051_v58 = vsub.s32 32, %v1349_v37 }
 0x1a5   :  { %v1311_v51 = vadd.f32 0.041655596, %v1310_v36  ;;  %v1318_v44 = vadd.f32 0.008332121, %v1317_v59  ;;  %v941_v30 = vadd.s32 %v939_v52, %v937_v57  ;;  %v961_v53 = vsel %vm960_vm14, 1, %v4221_v41 }
 0x1a6   :  { %v933_v43 = vshrl.u32 %v928_v55, 16  ;;  %v953_v61 = vshrl.u32 %v949_v23, 16  ;;  %v955_v16 = vshrl.u32 %v950_v39, 16  ;;  %v963_v63 = vadd.s32 %v961_v53, %v959_v29 }
 0x1a7   :  { %v1312_v12 = vmul.f32 %v1311_v51, %v1309_v2  ;;  %v1319_v45 = vmul.f32 %v1318_v44, %v1309_v2  ;;  %v942_v4 = vadd.s32 %v941_v30, %v931_v21  ;;  %v1353_v34 = vshrl.u32 %v4222_v14, %v4051_v58 }
 0x1a8   :  { %v4056_v42 = vadd.s32 %v958_v7, %v954_v18  ;;  %v964_v20 = vadd.s32 %v963_v63, %v953_v61  ;;  %v1352_v56 = vshll.u32 %v2948_v24, %v1349_v37  ;;  %v1356_v10 = vshrl.u32 %v4223_v5, %v4051_v58 }
 0x1a9   :  { %v1313_v48 = vadd.f32 -0.4999988, %v1312_v12  ;;  %v1320_v6 = vadd.f32 -0.16666654, %v1319_v45  ;;  %vm1330_vm1 = vcmp.eq.s32.totalorder %v4027_v28, 2  ;;  %v4062_v23 = vadd.s32 %v942_v4, %v933_v43 }
 0x1aa   :  { %v1355_v39 = vshll.u32 %v4222_v14, %v1349_v37  ;;  %vm1327_vm2 = vcmp.eq.s32.totalorder %v4027_v28, 0  ;;  %v965_v55 = vadd.s32 %v964_v20, %v955_v16  ;;  %v1359_v35 = vshrl.u32 %v4218_v49, %v4051_v58 }
 0x1ab   :  { %v1361_v40 = vshll.u32 %v4218_v49, %v1349_v37  ;;  %v1362_v1 = vshrl.u32 %v4219_v25, %v4051_v58  ;;  %v1314_v13 = vmul.f32 %v1313_v48, %v1309_v2  ;;  %v1321_v62 = vmul.f32 %v1320_v6, %v1309_v2 }
 0x1ac   :  { %vm1326_vm4 = vcmp.lt.s32.totalorder %v4027_v28, 2  ;;  %vm968_vm5 = vc.u32 %v4062_v23, %v4056_v42  ;;  %v4074_v18 = vor.u32 %v1353_v34, %v1352_v56  ;;  %vm1324_vm6 = vweird.f32 %v3608_v9 }
 0x1ad   :  { %v969_v14 = vadd.s32 1, %v965_v55  ;;  %v4077_v47 = vor.u32 %v1356_v10, %v1355_v39  ;;  %v1358_v27 = vshll.u32 %v4223_v5, %v1349_v37  ;;  %v1363_v49 = vor.u32 %v1362_v1, %v1361_v40 }
 0x1ae   :  { %v1315_v50 = vadd.f32 1.0, %v1314_v13  ;;  %v1322_v7 = vadd.f32 1.0, %v1321_v62  ;;  %v1364_v29 = vshll.u32 %v4219_v25, %v1349_v37  ;;  %v1365_v2 = vshrl.u32 %v4220_v26, %v4051_v58 }
 0x1af   :  { %vm2581_vm7 = vcmp.lt.s32.totalorder %v4029_v38, 2  ;;  %v970_v36 = vsel %vm968_vm5, %v969_v14, %v965_v55  ;;  %v4084_v59 = vor.u32 %v1359_v35, %v1358_v27  ;;  %vm1370_vm3 = vcmp.lt.s32.totalorder %v4036_v31, 4 }
 0x1b0   :  { %v1323_v57 = vmul.f32 %v1322_v7, %v4044_v33  ;;  %v1331_v21 = vxor.u32 2147483648, %v1315_v50  ;;  %v971_v5 = vadd.s32 %v970_v36, %v966_v11  ;;  %v1366_v52 = vor.u32 %v1365_v2, %v1364_v29 }
 0x1b1   :  { %vm2582_vm8 = vcmp.eq.s32.totalorder %v4029_v38, 0  ;;  %vm2585_vm9 = vcmp.eq.s32.totalorder %v4029_v38, 2  ;;  %vm1367_vm10 = vcmp.lt.s32.totalorder %v4036_v31, 1  ;;  %v1376_v25 = vsel %vm1370_vm3, %v1363_v49, 920167782 }
 0x1b2   :  { %v1328_v26 = vxor.u32 2147483648, %v1323_v57  ;;  %v972_v37 = vadd.s32 536870912, %v971_v5  ;;  %vm1369_vm11 = vcmp.lt.s32.totalorder %v4036_v31, 3  ;;  %v1375_v8 = vsel %vm1367_vm10, %v4074_v18, %v4077_v47 }
 0x1b3   :  { %v1332_v0 = vsel %vm1330_vm1, %v1331_v21, %v1323_v57  ;;  %v2587_v11 = vsel %vm2585_vm9, %v1331_v21, %v1323_v57  ;;  %v1377_v33 = vsel %vm1369_vm11, %v4084_v59, %v1376_v25  ;;  %v1380_v51 = vsel %vm1370_vm3, %v1366_v52, 1326507024 }
 0x1b4   :  { %v1329_v44 = vsel %vm1327_vm2, %v1315_v50, %v1328_v26  ;;  %v2584_v30 = vsel %vm2582_vm8, %v1315_v50, %v1328_v26  ;;  %v4110_v53 = vshrl.u32 %v972_v37, 30  ;;  %v1379_v43 = vsel %vm1367_vm10, %v4077_v47, %v4084_v59 }
 0x1b5   :  { %v1333_v61 = vsel %vm1326_vm4, %v1329_v44, %v1332_v0  ;;  %v2588_v16 = vsel %vm2581_vm7, %v2584_v30, %v2587_v11  ;;  %v1381_v63 = vsel %vm1369_vm11, %v1363_v49, %v1380_v51  ;;  %v4124_v12 = vshll.u32 %v1343_v60, 8 }
 0x1b6   :  { %v1334_v45 = vsel %vm1324_vm6, nan, %v1333_v61  ;;  %v2589_v4 = vsel %vm1324_vm6, nan, %v2588_v16  ;;  %v974_v34 = vshll.u32 %v4110_v53, 30  ;;  %vm1368_vm13 = vcmp.lt.s32.totalorder %v4036_v31, 2 }
 0x1b7   :  { %v1495_v28 = vmul.f32 %v3959_v17, %v1334_v45  ;;  %v2751_v38 = vmul.f32 %v3959_v17, %v2589_v4  ;;  %v1378_v20 = vsel %vm1368_vm13, %v1375_v8, %v1377_v33  ;;  %v1382_v22 = vsel %vm1368_vm13, %v1379_v43, %v1381_v63 }
 0x1b8   :  { %v975_v60 = vsub.s32 %v971_v5, %v974_v34  ;;  %v1386_v56 = vand.u32 65535, %v1382_v22  ;;  %v1384_v9 = vand.u32 65535, %v4124_v12  ;;  %v1387_v10 = vshrl.u32 %v1382_v22, 16 }
 0x1b9   :  { %1503 = vst [vmem:[#allocation2 + $0x30] sm:$0xff] %v1495_v28  ;;  %v1385_v6 = vshrl.u32 %v4124_v12, 16  ;;  %v1409_v39 = vshrl.u32 %v1378_v20, 16  ;;  %v1408_v40 = vand.u32 65535, %v1378_v20  ;;  %v967_v27 = vadd.s32 %v4056_v42, %v4062_v23 }
 0x1ba   :  { %2759 = vst [vmem:[#allocation4 + $0x30] sm:$0xff] %v2751_v38  ;;  %vm976_vm15 = vcmp.lt.s32.totalorder %v975_v60, 0  ;;  %v977_v48 = vsub.s32 0, %v975_v60  ;;  %v1389_v55 = vmul.u32 %v1387_v10, %v1384_v9  ;;  %v1388_v62 = vmul.u32 %v1386_v56, %v1384_v9 }
 0x1bb   :  { %v1390_v35 = vmul.u32 %v1386_v56, %v1385_v6  ;;  %v1411_v14 = vmul.u32 %v1409_v39, %v1384_v9  ;;  %v1351_v50 = vshrl.u32 %v2948_v24, %v4051_v58  ;;  %v1391_v7 = vmul.u32 %v1387_v10, %v1385_v6 }
 0x1bc   :  { %v978_v17 = vsel %vm976_vm15, %v977_v48, %v975_v60  ;;  %v1392_v13 = vshll.u32 %v1389_v55, 16  ;;  %v1412_v36 = vmul.u32 %v1408_v40, %v1385_v6  ;;  %v1393_v57 = vshrl.u32 %v1389_v55, 16 }
 0x1bd   :  { %v979_v1 = vclz %v978_v17  ;;  %v1394_v29 = vshll.u32 %v1390_v35, 16  ;;  %v1414_v5 = vshll.u32 %v1411_v14, 16  ;;  %v1410_v26 = vmul.u32 %v1408_v40, %v1384_v9 }
 0x1be   :  { %vm1396_vm0 = vc.u32 %v1388_v62, %v1392_v13  ;;  %v1398_v2 = vadd.s32 %v1392_v13, %v1388_v62  ;;  %v1413_v8 = vmul.u32 %v1409_v39, %v1385_v6  ;;  %v1416_v58 = vshll.u32 %v1412_v36, 16 }
 0x1bf   :  { %v2810_v49 = vadd.s32 4294967294, %v979_v1  ;;  %v1397_v21 = vsel %vm1396_vm0, 1, %v4221_v41  ;;  %vm1418_vm1 = vc.u32 %v1410_v26, %v1414_v5  ;;  %v1420_v0 = vadd.s32 %v1414_v5, %v1410_v26 }
 0x1c0   :  { %v1399_v25 = vadd.s32 %v1397_v21, %v1391_v7  ;;  %vm1400_vm14 = vc.u32 %v1398_v2, %v1394_v29  ;;  %v1419_v44 = vsel %vm1418_vm1, 1, %v4221_v41  ;;  %v1372_v30 = vsel %vm1370_vm3, %v4084_v59, 2102212464 }
 0x1c1   :  { %vm2811_vm12 = vcmp.lt.s32.totalorder %v2810_v49, 0  ;;  %v1401_v23 = vsel %vm1400_vm14, 1, %v4221_v41  ;;  %v1421_v61 = vadd.s32 %v1419_v44, %v1413_v8  ;;  %vm1422_vm2 = vc.u32 %v1420_v0, %v1416_v58 }
 0x1c2   :  { %v982_v52 = vsel %vm2811_vm12, 0, %v2810_v49  ;;  %v1403_v24 = vadd.s32 %v1401_v23, %v1399_v25  ;;  %v1395_v45 = vshrl.u32 %v1390_v35, 16  ;;  %v1423_v4 = vsel %vm1422_vm2, 1, %v4221_v41 }
 0x1c3   :  { %v983_v37 = vsub.s32 32, %v982_v52  ;;  %v987_v42 = vsub.s32 4294967266, %v982_v52  ;;  %v984_v11 = vshll.u32 %v975_v60, %v982_v52  ;;  %v1415_v34 = vshrl.u32 %v1411_v14, 16 }
 0x1c4   :  { %v1404_v43 = vadd.s32 %v1403_v24, %v1393_v57  ;;  %v1425_v28 = vadd.s32 %v1423_v4, %v1421_v61  ;;  %v1371_v20 = vsel %vm1367_vm10, %v1351_v50, %v4074_v18  ;;  %v1373_v22 = vsel %vm1369_vm11, %v4077_v47, %v1372_v30 }
 0x1c5   :  { %v985_v33 = vshrl.u32 %v967_v27, %v983_v37  ;;  %v988_v51 = vadd.s32 127, %v987_v42  ;;  %v1417_v60 = vshrl.u32 %v1412_v36, 16  ;;  %v1424_v48 = vadd.s32 %v1420_v0, %v1416_v58 }
 0x1c6   :  { %v4157_v59 = vadd.s32 %v1404_v43, %v1395_v45  ;;  %v1426_v56 = vadd.s32 %v1425_v28, %v1415_v34  ;;  %v1374_v41 = vsel %vm1368_vm13, %v1371_v20, %v1373_v22  ;;  %vm875_vm5 = vcmp.lt.s32.totalorder %v3885_v54, 0 }
 0x1c7   :  { %v986_v16 = vor.u32 %v985_v33, %v984_v11  ;;  %v989_v63 = vshll.u32 %v988_v51, 23  ;;  %v1428_v17 = vmul.u32 %v4124_v12, %v1374_v41  ;;  %v997_v47 = vsub.s32 4, %v4110_v53 }
 0x1c8   :  { %v1427_v6 = vadd.s32 %v1426_v56, %v1417_v60  ;;  %vm1430_vm4 = vc.u32 %v4157_v59, %v1424_v48  ;;  %vm874_vm6 = vcmp.le.f32.partialorder %v873_v32, 0.7853982  ;;  %v200_v26 = vmul.f32 1.442695, %v3892_v3 }
 0x1c9   :  { %v990_v38 = vor.u32 4788187, %v989_v63  ;;  %v993_v10 = vcvt.s32.f32 %v986_v16  ;;  %v998_v14 = vsel %vm875_vm5, %v997_v47, %v4110_v53  ;;  %vm1016_vm3 = vweird.f32 %v3885_v54 }
 0x1ca   :  { %v1431_v55 = vadd.s32 1, %v1427_v6  ;;  %v1000_v12 = vsel %vm874_vm6, 0, %v998_v14  ;;  %2884 = vpow2.f32 %v200_v26  ;;  %v1429_v43 = vadd.s32 %v1424_v48, %v4157_v59 }
 0x1cb   :  { %v991_v9 = vand.u32 2147483647, %v990_v38  ;;  %v2269_v21 = vadd.s32 3, %v1000_v12  ;;  %v1017_v42 = vand.u32 3, %v1000_v12  ;;  %vm1337_vm12 = vcmp.lt.s32.totalorder %v3911_v15, 0 }
 0x1cc   :  { %v1432_v35 = vsel %vm1430_vm4, %v1431_v55, %v1427_v6  ;;  %vm1336_vm14 = vcmp.le.f32.partialorder %v1335_v46, 0.7853982  ;;  %v206_v46 = vmul.f32 1.442695, %v3902_v19 }
 0x1cd   :  { %v994_v39 = vmul.f32 %v993_v10, %v991_v9  ;;  %v1433_v1 = vadd.s32 %v1432_v35, %v1428_v17  ;;  %v2270_v8 = vand.u32 3, %v2269_v21  ;;  %vm1018_vm8 = vcmp.lt.s32.totalorder %v1017_v42, 2 }
 0x1ce   :  { %vm1019_vm9 = vcmp.eq.s32.totalorder %v1017_v42, 0  ;;  %vm1022_vm10 = vcmp.eq.s32.totalorder %v1017_v42, 2  ;;  %2886 = vpow2.f32 %v206_v46 }
 0x1cf   :  { %v995_v18 = vxor.u32 2147483648, %v994_v39  ;;  %v1434_v62 = vadd.s32 536870912, %v1433_v1  ;;  %vm2271_vm11 = vcmp.lt.s32.totalorder %v2270_v8, 2  ;;  %vm2272_vm15 = vcmp.eq.s32.totalorder %v2270_v8, 0 }
 0x1d0   :  { %vm2275_vm0 = vcmp.eq.s32.totalorder %v2270_v8, 2  ;;  %v2885_v60 = vpop.eup %2884 }
 0x1d1   :  { %v996_v40 = vsel %vm875_vm5, %v995_v18, %v994_v39  ;;  %v4169_v50 = vshrl.u32 %v1434_v62, 30 }
 0x1d2   :  { %v999_v31 = vsel %vm874_vm6, %v3885_v54, %v996_v40 }
 0x1d3   :  { %v1001_v13 = vmul.f32 %v999_v31, %v999_v31  ;;  %v1436_v2 = vshll.u32 %v4169_v50, 30  ;;  %v1459_v54 = vsub.s32 4, %v4169_v50 }
 0x1d5   :  { %v1002_v27 = vmul.f32 -0.001358992, %v1001_v13  ;;  %v1009_v49 = vmul.f32 -0.00019511016, %v1001_v13  ;;  %v1437_v32 = vsub.s32 %v1433_v1, %v1436_v2 }
 0x1d7   :  { %v1003_v7 = vadd.f32 0.041655596, %v1002_v27  ;;  %v1010_v29 = vadd.f32 0.008332121, %v1009_v49  ;;  %vm1438_vm7 = vcmp.lt.s32.totalorder %v1437_v32, 0  ;;  %v1439_v25 = vsub.s32 0, %v1437_v32 }
 0x1d9   :  { %v1004_v36 = vmul.f32 %v1003_v7, %v1001_v13  ;;  %v1011_v57 = vmul.f32 %v1010_v29, %v1001_v13  ;;  %v1440_v23 = vsel %vm1438_vm7, %v1439_v25, %v1437_v32 }
 0x1da   :  { %v1441_v24 = vclz %v1440_v23 }
 0x1db   :  { %v1005_v5 = vadd.f32 -0.4999988, %v1004_v36  ;;  %v1012_v52 = vadd.f32 -0.16666654, %v1011_v57 }
 0x1dc   :  { %v2819_v11 = vadd.s32 4294967294, %v1441_v24  ;;  %v2887_v24 = vpop.eup %2886 }
 0x1dd   :  { %v1006_v53 = vmul.f32 %v1005_v5, %v1001_v13  ;;  %v1013_v37 = vmul.f32 %v1012_v52, %v1001_v13  ;;  %v1460_v13 = vsel %vm1337_vm12, %v1459_v54, %v4169_v50 }
 0x1de   :  { %vm2820_vm13 = vcmp.lt.s32.totalorder %v2819_v11, 0  ;;  %v1462_v27 = vsel %vm1336_vm14, 0, %v1460_v13 }
 0x1df   :  { %v1007_v58 = vadd.f32 1.0, %v1006_v53  ;;  %v1014_v0 = vadd.f32 1.0, %v1013_v37  ;;  %v1444_v44 = vsel %vm2820_vm13, 0, %v2819_v11  ;;  %v2734_v2 = vadd.s32 3, %v1462_v27 }
 0x1e0   :  { %v1445_v61 = vsub.s32 32, %v1444_v44  ;;  %v1449_v16 = vsub.s32 4294967266, %v1444_v44  ;;  %v1446_v34 = vshll.u32 %v1437_v32, %v1444_v44  ;;  %v1479_v5 = vand.u32 3, %v1462_v27 }
 0x1e1   :  { %v1015_v33 = vmul.f32 %v1014_v0, %v999_v31  ;;  %v1023_v51 = vxor.u32 2147483648, %v1007_v58  ;;  %v2735_v52 = vand.u32 3, %v2734_v2 }
 0x1e2   :  { %v1447_v20 = vshrl.u32 %v1429_v43, %v1445_v61  ;;  %v1450_v22 = vadd.s32 127, %v1449_v16  ;;  %vm1480_vm1 = vcmp.lt.s32.totalorder %v1479_v5, 2  ;;  %vm1481_vm2 = vcmp.eq.s32.totalorder %v1479_v5, 0 }
 0x1e3   :  { %v1020_v3 = vxor.u32 2147483648, %v1015_v33  ;;  %v1024_v30 = vsel %vm1022_vm10, %v1023_v51, %v1015_v33  ;;  %v2277_v4 = vsel %vm2275_vm0, %v1023_v51, %v1015_v33  ;;  %vm1484_vm4 = vcmp.eq.s32.totalorder %v1479_v5, 2 }
 0x1e4   :  { %v1448_v48 = vor.u32 %v1447_v20, %v1446_v34  ;;  %v1451_v41 = vshll.u32 %v1450_v22, 23  ;;  %vm2736_vm5 = vcmp.lt.s32.totalorder %v2735_v52, 2  ;;  %vm2737_vm6 = vcmp.eq.s32.totalorder %v2735_v52, 0 }
 0x1e5   :  { %v1021_v63 = vsel %vm1019_vm9, %v1007_v58, %v1020_v3  ;;  %v2274_v45 = vsel %vm2272_vm15, %v1007_v58, %v1020_v3  ;;  %vm2740_vm7 = vcmp.eq.s32.totalorder %v2735_v52, 2 }
 0x1e6   :  { %v1025_v28 = vsel %vm1018_vm8, %v1021_v63, %v1024_v30  ;;  %v2278_v38 = vsel %vm2271_vm11, %v2274_v45, %v2277_v4  ;;  %v1452_v6 = vor.u32 4788187, %v1451_v41  ;;  %v1455_v55 = vcvt.s32.f32 %v1448_v48 }
 0x1e7   :  { %v1026_v56 = vsel %vm1016_vm3, nan, %v1025_v28  ;;  %v2279_v9 = vsel %vm1016_vm3, nan, %v2278_v38  ;;  %vm1478_vm3 = vweird.f32 %v3911_v15 }
 0x1e8   :  { %v1493_v10 = vmul.f32 %v2885_v60, %v1026_v56  ;;  %v2749_v59 = vmul.f32 %v2885_v60, %v2279_v9  ;;  %v1453_v39 = vand.u32 2147483647, %v1452_v6 }
 0x1ea   :  { %1501 = vst [vmem:[#allocation2 + $0x20] sm:$0xff] %v1493_v10  ;;  %v1456_v18 = vmul.f32 %v1455_v55, %v1453_v39 }
 0x1eb   :  { %2757 = vst [vmem:[#allocation4 + $0x20] sm:$0xff] %v2749_v59 }
 0x1ec   :  { %v1457_v17 = vxor.u32 2147483648, %v1456_v18 }
 0x1ee   :  { %v1458_v47 = vsel %vm1337_vm12, %v1457_v17, %v1456_v18 }
 0x1ef   :  { %v1461_v35 = vsel %vm1336_vm14, %v3911_v15, %v1458_v47 }
 0x1f0   :  { %v1463_v40 = vmul.f32 %v1461_v35, %v1461_v35 }
 0x1f2   :  { %v1464_v1 = vmul.f32 -0.001358992, %v1463_v40  ;;  %v1471_v31 = vmul.f32 -0.00019511016, %v1463_v40 }
 0x1f4   :  { %v1465_v62 = vadd.f32 0.041655596, %v1464_v1  ;;  %v1472_v14 = vadd.f32 0.008332121, %v1471_v31 }
 0x1f6   :  { %v1466_v49 = vmul.f32 %v1465_v62, %v1463_v40  ;;  %v1473_v12 = vmul.f32 %v1472_v14, %v1463_v40 }
 0x1f8   :  { %v1467_v7 = vadd.f32 -0.4999988, %v1466_v49  ;;  %v1474_v29 = vadd.f32 -0.16666654, %v1473_v12 }
 0x1fa   :  { %v1468_v36 = vmul.f32 %v1467_v7, %v1463_v40  ;;  %v1475_v57 = vmul.f32 %v1474_v29, %v1463_v40 }
 0x1fc   :  { %v1469_v32 = vadd.f32 1.0, %v1468_v36  ;;  %v1476_v21 = vadd.f32 1.0, %v1475_v57 }
 0x1fe   :  { %v1477_v25 = vmul.f32 %v1476_v21, %v1461_v35  ;;  %v1485_v26 = vxor.u32 2147483648, %v1469_v32 }
 0x200   :  { %v1482_v50 = vxor.u32 2147483648, %v1477_v25  ;;  %v1486_v53 = vsel %vm1484_vm4, %v1485_v26, %v1477_v25  ;;  %v2742_v42 = vsel %vm2740_vm7, %v1485_v26, %v1477_v25 }
 0x202   :  { %v1483_v19 = vsel %vm1481_vm2, %v1469_v32, %v1482_v50  ;;  %v2739_v37 = vsel %vm2737_vm6, %v1469_v32, %v1482_v50 }
 0x203   :  { %v1487_v23 = vsel %vm1480_vm1, %v1483_v19, %v1486_v53  ;;  %v2743_v8 = vsel %vm2736_vm5, %v2739_v37, %v2742_v42 }
 0x204   :  { %v1488_v58 = vsel %vm1478_vm3, nan, %v1487_v23  ;;  %v2744_v0 = vsel %vm1478_vm3, nan, %v2743_v8 }
 0x205   :  { %v1496_v11 = vmul.f32 %v2887_v24, %v1488_v58  ;;  %v2752_v33 = vmul.f32 %v2887_v24, %v2744_v0 }
 0x207   :  { %1504 = vst [vmem:[#allocation2 + $0x38] sm:$0xff] %v1496_v11 }
 0x208   :  { %2760 = vst [vmem:[#allocation4 + $0x38] sm:$0xff] %v2752_v33  ;;  %2773 = dma.vmem_to_hbm [thread:$0]  %s2766_s20, 1024, %s2768_s23, [#allocation3], %s2956_s2, %s2956_s2, %s2957_s28  }
 0x209   :  { %2786 = dma.vmem_to_hbm [thread:$0]  %s2779_s25, 1024, %s2781_s0, [#allocation5], %s2956_s2, %s2956_s2, %s2957_s28  }
 0x20a   :  { %2941 = dma.done.wait [#allocation3], 1024  }
 0x20b   :  { %2942 = vsyncadd [#allocation3], 4294966272 }
 0x20c   :  { %2943 = dma.done.wait [#allocation5], 1024  }
 0x20d   :  { %2944 = vsyncadd [#allocation5], 4294966272 }
 0x20e   :  { %2795 = vsyncpa [#allocation3], 1 }
 0x20f   :  { %2796 = vsyncpa [#allocation5], 1 }

</bundles_post_ra>
